<compile_context>
chip_gen: v5e
topology: v5e:2x2
jax: 0.10.0
libtpu: 0.0.40
codegen_flags: <defaults>
</compile_context>

<pallas_src>
import functools

import jax
import jax.numpy as jnp
from jax import lax
from jax.experimental import pallas as pl
from jax.experimental.pallas import tpu as pltpu


# --------------------------------------------------------------------------
# Kernel 1: fused Q/K/V projection (the three 1x1 convs), channels-last.
# --------------------------------------------------------------------------
def _proj_kernel(x_ref, wq_ref, wk_ref, wv_ref, bq_ref, bk_ref, bv_ref,
                 q_ref, k_ref, v_ref):
    # x_ref : (1, TP, C) bf16      w*_ref : (C, C8|C) bf16     b*_ref : (1, C8|C) f32
    # outputs: q (1, TP, C8), k (1, TP, C8), v (1, TP, C)  -- all bf16
    x = x_ref[0]
    q = jnp.dot(x, wq_ref[...], preferred_element_type=jnp.float32) + bq_ref[...]
    k = jnp.dot(x, wk_ref[...], preferred_element_type=jnp.float32) + bk_ref[...]
    v = jnp.dot(x, wv_ref[...], preferred_element_type=jnp.float32) + bv_ref[...]
    q_ref[0] = q.astype(q_ref.dtype)
    k_ref[0] = k.astype(k_ref.dtype)
    v_ref[0] = v.astype(v_ref.dtype)


# --------------------------------------------------------------------------
# Kernel 2: position attention over one query stripe.
# --------------------------------------------------------------------------
def _attn_kernel(x_ref, q_ref, kT_ref, v_ref, gamma_ref, out_ref, *, n_valid):
    # x_ref    : (1, TQ, C)   f32   residual stripe (kept f32 for exact identity)
    # q_ref    : (1, TQ, C8)  bf16
    # kT_ref   : (1, C8, Np)  bf16  resident per batch element
    # v_ref    : (1, Np, C)   bf16  resident per batch element
    # gamma_ref: (1,)         f32   in SMEM
    # out_ref  : (1, TQ, C)   f32
    energy = jnp.dot(q_ref[0], kT_ref[0],
                     preferred_element_type=jnp.float32)          # (TQ, Np) f32

    if n_valid != energy.shape[-1]:                                # static condition
        col = lax.broadcasted_iota(jnp.int32, energy.shape, 1)
        energy = jnp.where(col < n_valid, energy, -1e30)           # mask padded keys

    # Softmax with deferred normalization: only exp + row-sum touch (TQ, Np);
    # the divide is applied to the (TQ, C) result after the P·V matmul.
    m = jnp.max(energy, axis=-1, keepdims=True)
    e = jnp.exp(energy - m)                                        # f32 (v5e-safe)
    s = jnp.sum(e, axis=-1, keepdims=True)

    pv = jnp.dot(e.astype(v_ref.dtype), v_ref[0],
                 preferred_element_type=jnp.float32)               # (TQ, C) f32
    out = pv * pl.reciprocal(s, approx=False)                      # (TQ, 1) recips only

    out_ref[0] = (gamma_ref[0] * out + x_ref[0]).astype(out_ref.dtype)


# --------------------------------------------------------------------------
# Tiling / VMEM heuristics.
# --------------------------------------------------------------------------
def _vmem_limit_bytes():
    cap = 64 * 1024 * 1024                      # conservative default (v7x physical)
    try:
        info = pltpu.get_tpu_info()
        cap = int(getattr(info, "vmem_capacity_bytes", cap))
    except Exception:
        pass
    if not cap or cap < (16 << 20):
        cap = 64 << 20
    return (cap * 3) // 4                       # 96 MiB on 128-MiB parts, 48 MiB on v7x


def _tq_cap(n, vmem_limit):
    if vmem_limit >= 80 * 1024 * 1024:          # v5e / v6e (128 MiB physical VMEM)
        return 1024
    return 256 if n >= 8192 else 512            # v7x (64 MiB physical VMEM)


def _pick_tile(n, cap):
    """Largest multiple-of-8 tile <= cap dividing n; otherwise pad n (+mask)."""
    best, t, limit = 0, 8, min(cap, n)
    while t <= limit:
        if n % t == 0:
            best = t
        t += 8
    if best >= min(128, n):                     # good divisor found, no padding
        return best, n
    tile = min(cap, ((n + 7) // 8) * 8)
    n_pad = ((n + tile - 1) // tile) * tile
    return tile, n_pad


# --------------------------------------------------------------------------
# Wrapper: NCHW in, NCHW out (matches PyTorch PAM_Module.forward).
# --------------------------------------------------------------------------
def pam_module_forward(x_nchw, wq, bq, wk, bk, wv, bv, gamma, *, tq=None):
    B, C, H, W = x_nchw.shape
    N = H * W
    C8 = wq.shape[0]

    vmem_limit = _vmem_limit_bytes()
    cap = _tq_cap(N, vmem_limit)
    if tq is None:
        tq, n_pad = _pick_tile(N, cap)
    else:
        assert N % tq == 0
        n_pad = N

    # NCHW -> (B, N, C). f32 copy for the residual, bf16 copy for the matmuls.
    x_bnc = jnp.transpose(x_nchw.reshape(B, C, N), (0, 2, 1))
    if n_pad != N:
        x_bnc = jnp.pad(x_bnc, ((0, 0), (0, n_pad - N), (0, 0)))
    x_bf16 = x_bnc.astype(jnp.bfloat16)

    # Pre-transposed 1x1-conv weights (host side, once).
    wq_t = wq.T.astype(jnp.bfloat16)            # (C, C8)
    wk_t = wk.T.astype(jnp.bfloat16)            # (C, C8)
    wv_t = wv.T.astype(jnp.bfloat16)            # (C, C)
    bq2 = bq.reshape(1, C8).astype(jnp.float32)
    bk2 = bk.reshape(1, C8).astype(jnp.float32)
    bv2 = bv.reshape(1, C).astype(jnp.float32)

    # ---- 1) Q/K/V projection --------------------------------------------
    q_bnc, k_bnc, v_bnc = pl.pallas_call(
        _proj_kernel,
        out_shape=(jax.ShapeDtypeStruct((B, n_pad, C8), jnp.bfloat16),
                   jax.ShapeDtypeStruct((B, n_pad, C8), jnp.bfloat16),
                   jax.ShapeDtypeStruct((B, n_pad, C), jnp.bfloat16)),
        grid_spec=pltpu.PrefetchScalarGridSpec(
            num_scalar_prefetch=0,
            grid=(B, n_pad // tq),
            in_specs=[
                pl.BlockSpec((1, tq, C), lambda b, p: (b, p, 0)),   # x (bf16)
                pl.BlockSpec((C, C8), lambda b, p: (0, 0)),         # Wq^T
                pl.BlockSpec((C, C8), lambda b, p: (0, 0)),         # Wk^T
                pl.BlockSpec((C, C), lambda b, p: (0, 0)),          # Wv^T
                pl.BlockSpec((1, C8), lambda b, p: (0, 0)),         # bq
                pl.BlockSpec((1, C8), lambda b, p: (0, 0)),         # bk
                pl.BlockSpec((1, C), lambda b, p: (0, 0)),          # bv
            ],
            out_specs=[
                pl.BlockSpec((1, tq, C8), lambda b, p: (b, p, 0)),  # q
                pl.BlockSpec((1, tq, C8), lambda b, p: (b, p, 0)),  # k
                pl.BlockSpec((1, tq, C), lambda b, p: (b, p, 0)),   # v
            ],
        ),
        compiler_params=pltpu.CompilerParams(
            dimension_semantics=("parallel", "parallel"),
            vmem_limit_bytes=vmem_limit,
        ),
    )(x_bf16, wq_t, wk_t, wv_t, bq2, bk2, bv2)

    # Transpose k ONCE per forward (tiny array) so the attention kernel sees a
    # (C8, N) operand and the energy matmul is plain NN -- no per-stripe
    # relayout of k inside the kernel.
    kT = jnp.swapaxes(k_bnc, 1, 2)              # (B, C8, n_pad) bf16

    gamma1 = gamma.reshape(1).astype(jnp.float32)

    cost = pl.CostEstimate(
        flops=int(B * (2 * n_pad * n_pad * C8 + 2 * n_pad * n_pad * C)),
        transcendentals=int(B * n_pad * n_pad),
        bytes_accessed=int(B * n_pad * C * (4 + 2 + 4)
                           + B * n_pad * C8 * 2 * 2
                           + B * (n_pad // tq) * n_pad * (C8 + C) * 2),
    )

    # ---- 2) Position attention ------------------------------------------
    out_bnc = pl.pallas_call(
        functools.partial(_attn_kernel, n_valid=N),
        out_shape=jax.ShapeDtypeStruct((B, n_pad, C), jnp.float32),
        grid_spec=pltpu.PrefetchScalarGridSpec(
            num_scalar_prefetch=0,
            grid=(B, n_pad // tq),
            in_specs=[
                pl.BlockSpec((1, tq, C), lambda b, q: (b, q, 0)),      # x residual (f32)
                pl.BlockSpec((1, tq, C8), lambda b, q: (b, q, 0)),     # q stripe
                pl.BlockSpec((1, C8, n_pad), lambda b, q: (b, 0, 0)),  # kT, per-batch resident
                pl.BlockSpec((1, n_pad, C), lambda b, q: (b, 0, 0)),   # v,  per-batch resident
                pl.BlockSpec(memory_space=pltpu.MemorySpace.SMEM),     # gamma scalar
            ],
            out_specs=pl.BlockSpec((1, tq, C), lambda b, q: (b, q, 0)),
        ),
        compiler_params=pltpu.CompilerParams(
            dimension_semantics=("parallel", "parallel"),
            vmem_limit_bytes=vmem_limit,
        ),
        cost_estimate=cost,
    )(x_bnc, q_bnc, kT, v_bnc, gamma1)

    if n_pad != N:
        out_bnc = out_bnc[:, :N, :]
    return jnp.transpose(out_bnc, (0, 2, 1)).reshape(B, C, H, W)


# --------------------------------------------------------------------------
# Pure-JAX reference (mirrors the PyTorch module exactly).
# --------------------------------------------------------------------------
def _reference(x_nchw, wq, bq, wk, bk, wv, bv, gamma):
    B, C, H, W = x_nchw.shape
    N = H * W
    xf = x_nchw.reshape(B, C, N)                                   # (B, C, N)
    q = jnp.einsum('oc,bcn->bon', wq, xf) + bq[None, :, None]      # (B, C8, N)
    k = jnp.einsum('oc,bcn->bon', wk, xf) + bk[None, :, None]      # (B, C8, N)
    v = jnp.einsum('oc,bcn->bon', wv, xf) + bv[None, :, None]      # (B, C, N)
    energy = jnp.einsum('bci,bcj->bij', q, k)                      # (B, N, N)
    att = jax.nn.softmax(energy, axis=-1)
    out = jnp.einsum('bcj,bij->bci', v, att)                       # (B, C, N)
    return (gamma[0] * out + xf).reshape(B, C, H, W)


if __name__ == "__main__":
    key = jax.random.PRNGKey(0)
    B, C, H, W = 2, 16, 32, 32          # N = 1024, C8 = 2
    C8 = C // 8

    k0, k1, k2, k3, k4, k5, k6, k7 = jax.random.split(key, 8)
    x = jax.random.normal(k0, (B, C, H, W), dtype=jnp.float32)
    wq = jax.random.normal(k1, (C8, C), dtype=jnp.float32) * 0.1
    bq = jax.random.normal(k2, (C8,), dtype=jnp.float32) * 0.1
    wk = jax.random.normal(k3, (C8, C), dtype=jnp.float32) * 0.1
    bk = jax.random.normal(k4, (C8,), dtype=jnp.float32) * 0.1
    wv = jax.random.normal(k5, (C, C), dtype=jnp.float32) * 0.1
    bv = jax.random.normal(k6, (C,), dtype=jnp.float32) * 0.1
    # gamma is zero-initialized in the PyTorch module; use 0.5 so the attention
    # path is actually exercised, and also verify the exact-identity case below.
    gamma = jnp.array([0.5], dtype=jnp.float32)

    out = jax.block_until_ready(pam_module_forward(x, wq, bq, wk, bk, wv, bv, gamma))
    ref = _reference(x, wq, bq, wk, bk, wv, bv, gamma)
    assert out.shape == (B, C, H, W)
    assert jnp.allclose(out, ref, atol=3e-2, rtol=3e-2), "mismatch vs reference (N=1024)"

    # gamma = 0 (the module's init value) must be an exact identity: the
    # residual now uses the untouched f32 x stripe.
    gamma0 = jnp.zeros((1,), dtype=jnp.float32)
    out0 = jax.block_until_ready(pam_module_forward(x, wq, bq, wk, bk, wv, bv, gamma0))
    assert jnp.array_equal(out0, x), "gamma=0 should be an exact identity"

    # Non-multiple-of-8 spatial size exercises the padding + key-mask path.
    x2 = jax.random.normal(k7, (B, C, 10, 10), dtype=jnp.float32)   # N = 100 -> padded
    out2 = jax.block_until_ready(pam_module_forward(x2, wq, bq, wk, bk, wv, bv, gamma))
    ref2 = _reference(x2, wq, bq, wk, bk, wv, bv, gamma)
    assert jnp.allclose(out2, ref2, atol=3e-2, rtol=3e-2), "mismatch vs reference (padded N)"

    print("KERNEL_OK")
</pallas_src>

<mosaic_0001>
module attributes {stable_mosaic.version = 11 : i64} {
  func.func @_proj_kernel(%arg0: i32, %arg1: i32, %arg2: memref<1x512x16xbf16, #tpu.memory_space<vmem>>, %arg3: memref<16x2xbf16, #tpu.memory_space<vmem>>, %arg4: memref<16x2xbf16, #tpu.memory_space<vmem>>, %arg5: memref<16x16xbf16, #tpu.memory_space<vmem>>, %arg6: memref<1x2xf32, #tpu.memory_space<vmem>>, %arg7: memref<1x2xf32, #tpu.memory_space<vmem>>, %arg8: memref<1x16xf32, #tpu.memory_space<vmem>>, %arg9: memref<1x512x2xbf16, #tpu.memory_space<vmem>>, %arg10: memref<1x512x2xbf16, #tpu.memory_space<vmem>>, %arg11: memref<1x512x16xbf16, #tpu.memory_space<vmem>>) attributes {dimension_semantics = [#tpu.dimension_semantics<parallel>, #tpu.dimension_semantics<parallel>], iteration_bounds = array<i64: 2, 2>, scalar_prefetch = 0 : i64, scratch_operands = 0 : i64, tpu.core_type = #tpu.core_type<tc>, window_params = [{transform_indices = @transform_0, window_bounds = array<i64: 1, 512, 16>}, {pipeline_mode = #tpu.pipeline_mode<synchronous>, transform_indices = @transform_1, window_bounds = array<i64: 16, 2>}, {pipeline_mode = #tpu.pipeline_mode<synchronous>, transform_indices = @transform_2, window_bounds = array<i64: 16, 2>}, {pipeline_mode = #tpu.pipeline_mode<synchronous>, transform_indices = @transform_3, window_bounds = array<i64: 16, 16>}, {pipeline_mode = #tpu.pipeline_mode<synchronous>, transform_indices = @transform_4, window_bounds = array<i64: 1, 2>}, {pipeline_mode = #tpu.pipeline_mode<synchronous>, transform_indices = @transform_5, window_bounds = array<i64: 1, 2>}, {pipeline_mode = #tpu.pipeline_mode<synchronous>, transform_indices = @transform_6, window_bounds = array<i64: 1, 16>}, {transform_indices = @transform_7, window_bounds = array<i64: 1, 512, 2>}, {transform_indices = @transform_8, window_bounds = array<i64: 1, 512, 2>}, {transform_indices = @transform_9, window_bounds = array<i64: 1, 512, 16>}]} {
    %c0 = arith.constant 0 : index
    %c0_0 = arith.constant 0 : index
    %c0_1 = arith.constant 0 : index
    %0 = vector.load %arg2[%c0, %c0_0, %c0_1] : memref<1x512x16xbf16, #tpu.memory_space<vmem>>, vector<1x512x16xbf16>
    %1 = vector.shape_cast %0 : vector<1x512x16xbf16> to vector<512x16xbf16>
    %c0_2 = arith.constant 0 : index
    %c0_3 = arith.constant 0 : index
    %2 = vector.load %arg3[%c0_2, %c0_3] : memref<16x2xbf16, #tpu.memory_space<vmem>>, vector<16x2xbf16>
    %cst = arith.constant dense<0.000000e+00> : vector<512x2xf32>
    %3 = tpu.matmul %1, %2, %cst {dimension_numbers = #tpu.dot_dimension_numbers<[1], [0], [0], [1], [0, 0, 1, 1], [], []>} : vector<512x16xbf16>, vector<16x2xbf16>, vector<512x2xf32> -> vector<512x2xf32>
    %c0_4 = arith.constant 0 : index
    %c0_5 = arith.constant 0 : index
    %4 = vector.load %arg6[%c0_4, %c0_5] : memref<1x2xf32, #tpu.memory_space<vmem>>, vector<1x2xf32>
    %5 = vector.broadcast %4 : vector<1x2xf32> to vector<512x2xf32>
    %6 = arith.addf %3, %5 : vector<512x2xf32>
    %c0_6 = arith.constant 0 : index
    %c0_7 = arith.constant 0 : index
    %7 = vector.load %arg4[%c0_6, %c0_7] : memref<16x2xbf16, #tpu.memory_space<vmem>>, vector<16x2xbf16>
    %cst_8 = arith.constant dense<0.000000e+00> : vector<512x2xf32>
    %8 = tpu.matmul %1, %7, %cst_8 {dimension_numbers = #tpu.dot_dimension_numbers<[1], [0], [0], [1], [0, 0, 1, 1], [], []>} : vector<512x16xbf16>, vector<16x2xbf16>, vector<512x2xf32> -> vector<512x2xf32>
    %c0_9 = arith.constant 0 : index
    %c0_10 = arith.constant 0 : index
    %9 = vector.load %arg7[%c0_9, %c0_10] : memref<1x2xf32, #tpu.memory_space<vmem>>, vector<1x2xf32>
    %10 = vector.broadcast %9 : vector<1x2xf32> to vector<512x2xf32>
    %11 = arith.addf %8, %10 : vector<512x2xf32>
    %c0_11 = arith.constant 0 : index
    %c0_12 = arith.constant 0 : index
    %12 = vector.load %arg5[%c0_11, %c0_12] : memref<16x16xbf16, #tpu.memory_space<vmem>>, vector<16x16xbf16>
    %cst_13 = arith.constant dense<0.000000e+00> : vector<512x16xf32>
    %13 = tpu.matmul %1, %12, %cst_13 {dimension_numbers = #tpu.dot_dimension_numbers<[1], [0], [0], [1], [0, 0, 1, 1], [], []>} : vector<512x16xbf16>, vector<16x16xbf16>, vector<512x16xf32> -> vector<512x16xf32>
    %c0_14 = arith.constant 0 : index
    %c0_15 = arith.constant 0 : index
    %14 = vector.load %arg8[%c0_14, %c0_15] : memref<1x16xf32, #tpu.memory_space<vmem>>, vector<1x16xf32>
    %15 = vector.broadcast %14 : vector<1x16xf32> to vector<512x16xf32>
    %16 = arith.addf %13, %15 : vector<512x16xf32>
    %17 = arith.truncf %6 : vector<512x2xf32> to vector<512x2xbf16>
    %c0_16 = arith.constant 0 : index
    %c0_17 = arith.constant 0 : index
    %c0_18 = arith.constant 0 : index
    %18 = vector.load %arg9[%c0_16, %c0_17, %c0_18] : memref<1x512x2xbf16, #tpu.memory_space<vmem>>, vector<1x512x2xbf16>
    %19 = vector.shape_cast %18 : vector<1x512x2xbf16> to vector<512x2xbf16>
    %20 = vector.shape_cast %17 : vector<512x2xbf16> to vector<1x512x2xbf16>
    tpu.vector_store %arg9[%c0_16, %c0_17, %c0_18], %20 {strides = array<i32>} : memref<1x512x2xbf16, #tpu.memory_space<vmem>>, vector<1x512x2xbf16>,
    %21 = arith.truncf %11 : vector<512x2xf32> to vector<512x2xbf16>
    %c0_19 = arith.constant 0 : index
    %c0_20 = arith.constant 0 : index
    %c0_21 = arith.constant 0 : index
    %22 = vector.load %arg10[%c0_19, %c0_20, %c0_21] : memref<1x512x2xbf16, #tpu.memory_space<vmem>>, vector<1x512x2xbf16>
    %23 = vector.shape_cast %22 : vector<1x512x2xbf16> to vector<512x2xbf16>
    %24 = vector.shape_cast %21 : vector<512x2xbf16> to vector<1x512x2xbf16>
    tpu.vector_store %arg10[%c0_19, %c0_20, %c0_21], %24 {strides = array<i32>} : memref<1x512x2xbf16, #tpu.memory_space<vmem>>, vector<1x512x2xbf16>,
    %25 = arith.truncf %16 : vector<512x16xf32> to vector<512x16xbf16>
    %c0_22 = arith.constant 0 : index
    %c0_23 = arith.constant 0 : index
    %c0_24 = arith.constant 0 : index
    %26 = vector.load %arg11[%c0_22, %c0_23, %c0_24] : memref<1x512x16xbf16, #tpu.memory_space<vmem>>, vector<1x512x16xbf16>
    %27 = vector.shape_cast %26 : vector<1x512x16xbf16> to vector<512x16xbf16>
    %28 = vector.shape_cast %25 : vector<512x16xbf16> to vector<1x512x16xbf16>
    tpu.vector_store %arg11[%c0_22, %c0_23, %c0_24], %28 {strides = array<i32>} : memref<1x512x16xbf16, #tpu.memory_space<vmem>>, vector<1x512x16xbf16>,
    return
  }
  func.func @transform_0(%arg0: i32, %arg1: i32) -> (i32, i32, i32) {
    %c0_i32 = arith.constant 0 : i32
    %c0_i32_0 = arith.constant 0 : i32
    return %arg0, %arg1, %c0_i32 : i32, i32, i32
  }
  func.func @transform_1(%arg0: i32, %arg1: i32) -> (i32, i32) {
    %c0_i32 = arith.constant 0 : i32
    %c0_i32_0 = arith.constant 0 : i32
    %c0_i32_1 = arith.constant 0 : i32
    return %c0_i32, %c0_i32_0 : i32, i32
  }
  func.func @transform_2(%arg0: i32, %arg1: i32) -> (i32, i32) {
    %c0_i32 = arith.constant 0 : i32
    %c0_i32_0 = arith.constant 0 : i32
    %c0_i32_1 = arith.constant 0 : i32
    return %c0_i32, %c0_i32_0 : i32, i32
  }
  func.func @transform_3(%arg0: i32, %arg1: i32) -> (i32, i32) {
    %c0_i32 = arith.constant 0 : i32
    %c0_i32_0 = arith.constant 0 : i32
    %c0_i32_1 = arith.constant 0 : i32
    return %c0_i32, %c0_i32_0 : i32, i32
  }
  func.func @transform_4(%arg0: i32, %arg1: i32) -> (i32, i32) {
    %c0_i32 = arith.constant 0 : i32
    %c0_i32_0 = arith.constant 0 : i32
    %c0_i32_1 = arith.constant 0 : i32
    return %c0_i32, %c0_i32_0 : i32, i32
  }
  func.func @transform_5(%arg0: i32, %arg1: i32) -> (i32, i32) {
    %c0_i32 = arith.constant 0 : i32
    %c0_i32_0 = arith.constant 0 : i32
    %c0_i32_1 = arith.constant 0 : i32
    return %c0_i32, %c0_i32_0 : i32, i32
  }
  func.func @transform_6(%arg0: i32, %arg1: i32) -> (i32, i32) {
    %c0_i32 = arith.constant 0 : i32
    %c0_i32_0 = arith.constant 0 : i32
    %c0_i32_1 = arith.constant 0 : i32
    return %c0_i32, %c0_i32_0 : i32, i32
  }
  func.func @transform_7(%arg0: i32, %arg1: i32) -> (i32, i32, i32) {
    %c0_i32 = arith.constant 0 : i32
    %c0_i32_0 = arith.constant 0 : i32
    return %arg0, %arg1, %c0_i32 : i32, i32, i32
  }
  func.func @transform_8(%arg0: i32, %arg1: i32) -> (i32, i32, i32) {
    %c0_i32 = arith.constant 0 : i32
    %c0_i32_0 = arith.constant 0 : i32
    return %arg0, %arg1, %c0_i32 : i32, i32, i32
  }
  func.func @transform_9(%arg0: i32, %arg1: i32) -> (i32, i32, i32) {
    %c0_i32 = arith.constant 0 : i32
    %c0_i32_0 = arith.constant 0 : i32
    return %arg0, %arg1, %c0_i32 : i32, i32, i32
  }
}

</mosaic_0001>

<bundles_post_ra>
// kernel: tpu_custom_call.1
= control target key start
LH: loop header
LB: loop body
LE: loop exit
PB: predicated region body
PF: predicated region fallthrough
CT: control target
= control target key end

     0   :  { %s2292_s30 = smov 0   ;;  %s2294_s10 = smov 0   ;;  %s3146_s0 = inlined_call_operand.vmem [shape: bf16[2,1024,16], index: 0, kind: input, shape index: {}]   ;;  %s3147_s1 = inlined_call_operand.vmem [shape: bf16[16,2], index: 1, kind: input, shape index: {}]   ;;  %s3148_s2 = inlined_call_operand.vmem [shape: bf16[16,2], index: 2, kind: input, shape index: {}]   ;;  %s3149_s3 = inlined_call_operand.vmem [shape: bf16[16,16], index: 3, kind: input, shape index: {}]   ;;  %s3150_s4 = inlined_call_operand.vmem [shape: f32[1,2], index: 4, kind: input, shape index: {}]   ;;  %s3151_s5 = inlined_call_operand.vmem [shape: f32[1,2], index: 5, kind: input, shape index: {}]   ;;  %s3152_s6 = inlined_call_operand.vmem [shape: f32[1,16], index: 6, kind: input, shape index: {}]   ;;  %s3153_s7 = inlined_call_operand.vmem [shape: bf16[2,1024,2], index: 7, kind: output, shape index: {0}]   ;;  %s3154_s8 = inlined_call_operand.vmem [shape: bf16[2,1024,2], index: 8, kind: output, shape index: {1}]   ;;  %s3155_s9 = inlined_call_operand.vmem [shape: bf16[2,1024,16], index: 9, kind: output, shape index: {2}]  }
   0x1   :  { %s2296_s11 = smov 0   ;;  %s2298_s12 = smov 0  }
   0x2   :  { %s2300_s13 = smov 0  }
   0x3 LB: > { %s29_s14 = sadd.s32 1, %s2232_s11  ;;  %s32_s15 = sadd.s32 1, %s2236_s12  ;;  %s2240_s13 = sphi %s2300_s13, %s20_s13   ;;  %s2236_s12 = sphi %s2298_s12, %s3159_s12   ;;  %s2232_s11 = sphi %s2296_s11, %s3158_s11   ;;  %s2228_s10 = sphi %s2294_s10, %s3157_s10   ;;  %s2224_s30 = sphi %s2292_s30, %s3156_s30  }
   0x4   : > { %p30_p0 = scmp.ge.s32.totalorder %s29_s14, 2  ;;  %p1864_p1 = scmp.ge.s32.totalorder %s2240_s13, 1 }
   0x5   : > { %p317_p2 = scmp.lt.s32.totalorder %s2240_s13, 5 }
   0x6   : > { %s3161_s14 = smov (%p30_p0, %s29_s14), 0  ;;  %s3163_s15 = smov (!%p30_p0, %s32_s15), %s2236_s12 }
   0x7   : > { %p318_p3 = pnand %p1864_p1, %p317_p2  ;;  %p34_p4 = scmp.ge.s32.totalorder %s3163_s15, 2 }
   0x8   : > { %s1865_s22 = sshll.u32 (!%p318_p3), %s2224_s30, 6  ;;  %p380_p5 = scmp.lt.s32.totalorder (!%p318_p3), %s2228_s10, 1 }
   0x9   : > { %s3165_s15 = smov (%p34_p4, %s3163_s15), 0  ;;  %321 = sbr.rel (%p318_p3) target bundleno = 535 (0x217), region = 48 }
   0xa   : > { %p382_p6 = scmp.lt.s32.totalorder (!%p318_p3), %s1865_s22, 127 }
   0xe   : > { %v2147_v0 = vld [vmem:[%s3147_s1] sm:$0xff]  ;;  %s3167_s10 = smov (!%p380_p5, %s2228_s10), 1  ;;  %s3169_s22 = smov (!%p382_p6, %s1865_s22), 127  ;;  %vm656_vm0 = vcmask 130048   ;;  %vm1348_vm1 = vcmask 11264   ;;  %vm1605_vm2 = vcmask 125952  }
   0xf   : > { %v2148_v1 = vld [vmem:[%s3148_s2] sm:$0xff]  ;;  %760 = vmatpush.bf16.msra.mxu0 %v2147_v0  ;;  %2150 = vmatpush.bf16.msra.mxu3 %v2147_v0  ;;  %s1866_s23 = sshll.u32 %s3167_s10, 7 }
  0x10   : > { %v2149_v2 = vld [vmem:[%s3149_s3] sm:$0xff]  ;;  %941 = vmatpush.bf16.msra.mxu1 %v2148_v1  ;;  %s385_s24 = sadd.s32 %s1866_s23, %s3169_s22 }
  0x11   : > { %1122 = vmatpush.bf16.msra.mxu2 %v2149_v2  ;;  %s2331_s25 = sshll.u32 %s385_s24, 2  ;;  %v2414_v19 = vld [vmem:[%s3150_s4] ss:$0 sm:$0xff] }
  0x12   : > { %s2337_s28 = scalar_lea.vmem %s3146_s0, %s2331_s25  ;;  %v2419_v20 = vld [vmem:[%s3151_s5] ss:$0 sm:$0xff]  ;;  %s2427_s19 = scalar_lea.vmem %s3153_s7, %s2331_s25 }
  0x13   : > { %2151 = vmatpush.bf16.msrb.mxu3 %v2148_v1  ;;  %v2115_v3 = vld [vmem:[%s2337_s28] sm:$0xff]  ;;  %v2116_v5 = vld [vmem:[%s2337_s28 + $0x8] sm:$0xff]  ;;  %v2117_v7 = vld [vmem:[%s2337_s28 + $0x10] sm:$0xff]  ;;  %s2434_s22 = scalar_lea.vmem %s3154_s8, %s2331_s25  ;;  %s2456_s29 = scalar_lea.vmem %s3155_s9, %s2331_s25 }
  0x14   : > { %v2341_v4 = vld [vmem:[%s2337_s28 + $0xc0] sm:$0xff]  ;;  %2009 = vmatmul.msk.bf16.vlgmr.msra.gmra.mxu0 %vm656_vm0, %v2115_v3  ;;  %2045 = vmatmul.msk.bf16.vlgmr.msra.gmra.mxu1 %vm656_vm0, %v2115_v3  ;;  %v2350_v6 = vld [vmem:[%s2337_s28 + $0xc8] sm:$0xff]  ;;  %v2359_v8 = vld [vmem:[%s2337_s28 + $0xd0] sm:$0xff] }
  0x15   : > { %2033 = vmatmul.msk.bf16.vlgmr.msra.gmra.mxu3 %vm656_vm0, %v2341_v4  ;;  %2081 = vmatmul.msk.bf16.vlgmr.msra.gmra.mxu2 %vm656_vm0, %v2115_v3  ;;  %v2118_v9 = vld [vmem:[%s2337_s28 + $0x18] sm:$0xff]  ;;  %v2119_v11 = vld [vmem:[%s2337_s28 + $0x20] sm:$0xff]  ;;  %v2120_v13 = vld [vmem:[%s2337_s28 + $0x28] sm:$0xff] }
  0x16   : > { %v2368_v10 = vld [vmem:[%s2337_s28 + $0xd8] sm:$0xff]  ;;  %v2377_v12 = vld [vmem:[%s2337_s28 + $0xe0] sm:$0xff]  ;;  %v2386_v14 = vld [vmem:[%s2337_s28 + $0xe8] sm:$0xff] }
  0x17   : > { %2152 = vmatpush.bf16.msra.mxu3 %v2149_v2  ;;  %v2121_v15 = vld [vmem:[%s2337_s28 + $0x30] sm:$0xff]  ;;  %v2122_v17 = vld [vmem:[%s2337_s28 + $0x38] sm:$0xff]  ;;  %v2123_v21 = vld [vmem:[%s2337_s28 + $0x40] sm:$0xff] }
  0x18   : > { %v2395_v16 = vld [vmem:[%s2337_s28 + $0xf0] sm:$0xff]  ;;  %v2404_v18 = vld [vmem:[%s2337_s28 + $0xf8] sm:$0xff]  ;;  %v2444_v28 = vld [vmem:[%s3152_s6] ss:$0 sm:$0xff] }
  0x19   : > { %v2124_v44 = vld [vmem:[%s2337_s28 + $0x48] sm:$0xff] }
  0x24   : > { %2010 = vmatmul.msk.bf16.gmra.mxu0 %vm656_vm0, %v2116_v5  ;;  %2046 = vmatmul.msk.bf16.gmra.mxu1 %vm656_vm0, %v2116_v5 }
  0x25   : > { %2034 = vmatmul.msk.bf16.gmra.mxu3 %vm656_vm0, %v2350_v6  ;;  %2082 = vmatmul.msk.bf16.gmra.mxu2 %vm656_vm0, %v2116_v5 }
  0x34   : > { %2011 = vmatmul.msk.bf16.gmra.mxu0 %vm656_vm0, %v2117_v7  ;;  %2047 = vmatmul.msk.bf16.gmra.mxu1 %vm656_vm0, %v2117_v7 }
  0x35   : > { %2035 = vmatmul.msk.bf16.gmra.mxu3 %vm656_vm0, %v2359_v8  ;;  %2083 = vmatmul.msk.bf16.gmra.mxu2 %vm656_vm0, %v2117_v7  ;;  %v2125_v7 = vld [vmem:[%s2337_s28 + $0x50] sm:$0xff] }
  0x44   : > { %2012 = vmatmul.msk.bf16.gmra.mxu0 %vm656_vm0, %v2118_v9  ;;  %2048 = vmatmul.msk.bf16.gmra.mxu1 %vm656_vm0, %v2118_v9 }
  0x45   : > { %2036 = vmatmul.msk.bf16.gmra.mxu3 %vm656_vm0, %v2368_v10  ;;  %2084 = vmatmul.msk.bf16.gmra.mxu2 %vm656_vm0, %v2118_v9 }
  0x54   : > { %2013 = vmatmul.msk.bf16.gmra.mxu0 %vm656_vm0, %v2119_v11  ;;  %2049 = vmatmul.msk.bf16.gmra.mxu1 %vm656_vm0, %v2119_v11 }
  0x55   : > { %2037 = vmatmul.msk.bf16.gmra.mxu3 %vm656_vm0, %v2377_v12  ;;  %2085 = vmatmul.msk.bf16.gmra.mxu2 %vm656_vm0, %v2119_v11 }
  0x64   : > { %2014 = vmatmul.msk.bf16.gmra.mxu0 %vm656_vm0, %v2120_v13  ;;  %2050 = vmatmul.msk.bf16.gmra.mxu1 %vm656_vm0, %v2120_v13 }
  0x65   : > { %2038 = vmatmul.msk.bf16.gmra.mxu3 %vm656_vm0, %v2386_v14  ;;  %2086 = vmatmul.msk.bf16.gmra.mxu2 %vm656_vm0, %v2120_v13 }
  0x74   : > { %2015 = vmatmul.msk.bf16.gmra.mxu0 %vm656_vm0, %v2121_v15  ;;  %2051 = vmatmul.msk.bf16.gmra.mxu1 %vm656_vm0, %v2121_v15 }
  0x75   : > { %2039 = vmatmul.msk.bf16.gmra.mxu3 %vm656_vm0, %v2395_v16  ;;  %2087 = vmatmul.msk.bf16.gmra.mxu2 %vm656_vm0, %v2121_v15 }
  0x84   : > { %2016 = vmatmul.msk.bf16.gmra.mxu0 %vm656_vm0, %v2122_v17  ;;  %2052 = vmatmul.msk.bf16.gmra.mxu1 %vm656_vm0, %v2122_v17 }
  0x85   : > { %2040 = vmatmul.msk.bf16.gmra.mxu3 %vm656_vm0, %v2404_v18  ;;  %2088 = vmatmul.msk.bf16.gmra.mxu2 %vm656_vm0, %v2122_v17 }
  0x91   : > { %v762_v22 = vpop.f32.mrf.mxu0  ;;  %v943_v24 = vpop.f32.mrf.mxu1 }
  0x92   : > { %v763_v23 = vadd.f32 %v2414_v19, %v762_v22  ;;  %v944_v25 = vadd.f32 %v2419_v20, %v943_v24 }
  0x94   : > { %v1284_v26 = vpack.c.bf16 %v763_v23, %v763_v23  ;;  %2017 = vmatmul.msk.bf16.gmra.mxu0 %vm656_vm0, %v2123_v21  ;;  %v1413_v27 = vpack.c.bf16 %v944_v25, %v944_v25  ;;  %2053 = vmatmul.msk.bf16.gmra.mxu1 %vm656_vm0, %v2123_v21 }
  0x95   : > { %2069 = vmatmul.msk.bf16.vlgmr.msrb.gmra.mxu3 %vm656_vm0, %v2341_v4  ;;  %2089 = vmatmul.msk.bf16.gmra.mxu2 %vm656_vm0, %v2123_v21 }
  0x96   : > { %1349 = vst.msk [vmem:[%s2427_s19] sm:$0xf] %vm1348_vm1, %v1284_v26 }
  0x97   : > { %1477 = vst.msk [vmem:[%s2434_s22] sm:$0xf] %vm1348_vm1, %v1413_v27 }
  0x98   : > { %v882_v29 = vpop.f32.mrf.mxu3  ;;  %v1124_v31 = vpop.f32.mrf.mxu2 }
  0x99   : > { %v883_v30 = vadd.f32 %v2414_v19, %v882_v29  ;;  %v1125_v32 = vadd.f32 %v2444_v28, %v1124_v31  ;;  %v764_v33 = vpop.f32.mrf.mxu0  ;;  %v945_v36 = vpop.f32.mrf.mxu1 }
  0x9a   : > { %v765_v35 = vadd.f32 %v2414_v19, %v764_v33  ;;  %v946_v38 = vadd.f32 %v2419_v20, %v945_v36 }
  0x9b   : > { %v1332_v34 = vpack.c.bf16 %v883_v30, %v883_v30  ;;  %v1541_v37 = vpack.c.bf16 %v1125_v32, %v1125_v32 }
  0x9c   : > { %v1285_v39 = vpack.c.bf16 %v765_v35, %v765_v35  ;;  %v1414_v40 = vpack.c.bf16 %v946_v38, %v946_v38 }
  0x9d   : > { %1397 = vst.msk [vmem:[%s2427_s19 + $0xc0] sm:$0xf] %vm1348_vm1, %v1332_v34 }
  0x9e   : > { %1606 = vst.msk [vmem:[%s2456_s29] sm:$0xf] %vm1605_vm2, %v1541_v37 }
  0x9f   : > { %1350 = vst.msk [vmem:[%s2427_s19 + $0x4] sm:$0xf] %vm1348_vm1, %v1285_v39 }
  0xa0   : > { %1478 = vst.msk [vmem:[%s2434_s22 + $0x4] sm:$0xf] %vm1348_vm1, %v1414_v40  ;;  %v884_v41 = vpop.f32.mrf.mxu3  ;;  %v1126_v43 = vpop.f32.mrf.mxu2 }
  0xa1   : > { %v885_v42 = vadd.f32 %v2414_v19, %v884_v41  ;;  %v1127_v45 = vadd.f32 %v2444_v28, %v1126_v43  ;;  %v767_v46 = vpop.f32.mrf.mxu0  ;;  %v948_v49 = vpop.f32.mrf.mxu1  ;;  %v2126_v41 = vld [vmem:[%s2337_s28 + $0x58] sm:$0xff] }
  0xa2   : > { %v768_v48 = vadd.f32 %v2414_v19, %v767_v46  ;;  %v949_v51 = vadd.f32 %v2419_v20, %v948_v49 }
  0xa3   : > { %v1333_v47 = vpack.c.bf16 %v885_v42, %v885_v42  ;;  %v1542_v50 = vpack.c.bf16 %v1127_v45, %v1127_v45 }
  0xa4   : > { %v1286_v52 = vpack.c.bf16 %v768_v48, %v768_v48  ;;  %2018 = vmatmul.msk.bf16.gmra.mxu0 %vm656_vm0, %v2124_v44  ;;  %v1415_v53 = vpack.c.bf16 %v949_v51, %v949_v51  ;;  %2054 = vmatmul.msk.bf16.gmra.mxu1 %vm656_vm0, %v2124_v44 }
  0xa5   : > { %1398 = vst.msk [vmem:[%s2427_s19 + $0xc4] sm:$0xf] %vm1348_vm1, %v1333_v47  ;;  %2070 = vmatmul.msk.bf16.gmra.mxu3 %vm656_vm0, %v2350_v6  ;;  %2090 = vmatmul.msk.bf16.gmra.mxu2 %vm656_vm0, %v2124_v44 }
  0xa6   : > { %1607 = vst.msk [vmem:[%s2456_s29 + $0x4] sm:$0xf] %vm1605_vm2, %v1542_v50 }
  0xa7   : > { %1351 = vst.msk [vmem:[%s2427_s19 + $0x8] sm:$0xf] %vm1348_vm1, %v1286_v52 }
  0xa8   : > { %1479 = vst.msk [vmem:[%s2434_s22 + $0x8] sm:$0xf] %vm1348_vm1, %v1415_v53  ;;  %v887_v54 = vpop.f32.mrf.mxu3  ;;  %v1129_v56 = vpop.f32.mrf.mxu2 }
  0xa9   : > { %v888_v55 = vadd.f32 %v2414_v19, %v887_v54  ;;  %v1130_v57 = vadd.f32 %v2444_v28, %v1129_v56  ;;  %v769_v58 = vpop.f32.mrf.mxu0  ;;  %v950_v61 = vpop.f32.mrf.mxu1 }
  0xaa   : > { %v770_v60 = vadd.f32 %v2414_v19, %v769_v58  ;;  %v951_v63 = vadd.f32 %v2419_v20, %v950_v61 }
  0xab   : > { %v1334_v59 = vpack.c.bf16 %v888_v55, %v888_v55  ;;  %v1543_v62 = vpack.c.bf16 %v1130_v57, %v1130_v57 }
  0xac   : > { %v1287_v0 = vpack.c.bf16 %v770_v60, %v770_v60  ;;  %v1416_v1 = vpack.c.bf16 %v951_v63, %v951_v63 }
  0xad   : > { %1399 = vst.msk [vmem:[%s2427_s19 + $0xc8] sm:$0xf] %vm1348_vm1, %v1334_v59 }
  0xae   : > { %1608 = vst.msk [vmem:[%s2456_s29 + $0x8] sm:$0xf] %vm1605_vm2, %v1543_v62 }
  0xaf   : > { %1352 = vst.msk [vmem:[%s2427_s19 + $0xc] sm:$0xf] %vm1348_vm1, %v1287_v0 }
  0xb0   : > { %1480 = vst.msk [vmem:[%s2434_s22 + $0xc] sm:$0xf] %vm1348_vm1, %v1416_v1  ;;  %v889_v2 = vpop.f32.mrf.mxu3  ;;  %v1131_v5 = vpop.f32.mrf.mxu2 }
  0xb1   : > { %v890_v3 = vadd.f32 %v2414_v19, %v889_v2  ;;  %v1132_v9 = vadd.f32 %v2444_v28, %v1131_v5  ;;  %v772_v11 = vpop.f32.mrf.mxu0  ;;  %v953_v17 = vpop.f32.mrf.mxu1  ;;  %v2127_v2 = vld [vmem:[%s2337_s28 + $0x60] sm:$0xff] }
  0xb2   : > { %v773_v15 = vadd.f32 %v2414_v19, %v772_v11  ;;  %v954_v22 = vadd.f32 %v2419_v20, %v953_v17 }
  0xb3   : > { %v1335_v13 = vpack.c.bf16 %v890_v3, %v890_v3  ;;  %v1544_v21 = vpack.c.bf16 %v1132_v9, %v1132_v9 }
  0xb4   : > { %v1288_v23 = vpack.c.bf16 %v773_v15, %v773_v15  ;;  %2019 = vmatmul.msk.bf16.gmra.mxu0 %vm656_vm0, %v2125_v7  ;;  %v1417_v24 = vpack.c.bf16 %v954_v22, %v954_v22  ;;  %2055 = vmatmul.msk.bf16.gmra.mxu1 %vm656_vm0, %v2125_v7 }
  0xb5   : > { %1400 = vst.msk [vmem:[%s2427_s19 + $0xcc] sm:$0xf] %vm1348_vm1, %v1335_v13  ;;  %2071 = vmatmul.msk.bf16.gmra.mxu3 %vm656_vm0, %v2359_v8  ;;  %2091 = vmatmul.msk.bf16.gmra.mxu2 %vm656_vm0, %v2125_v7 }
  0xb6   : > { %1609 = vst.msk [vmem:[%s2456_s29 + $0xc] sm:$0xf] %vm1605_vm2, %v1544_v21 }
  0xb7   : > { %1353 = vst.msk [vmem:[%s2427_s19 + $0x10] sm:$0xf] %vm1348_vm1, %v1288_v23 }
  0xb8   : > { %1481 = vst.msk [vmem:[%s2434_s22 + $0x10] sm:$0xf] %vm1348_vm1, %v1417_v24  ;;  %v892_v25 = vpop.f32.mrf.mxu3  ;;  %v1134_v27 = vpop.f32.mrf.mxu2 }
  0xb9   : > { %v893_v26 = vadd.f32 %v2414_v19, %v892_v25  ;;  %v1135_v29 = vadd.f32 %v2444_v28, %v1134_v27  ;;  %v774_v30 = vpop.f32.mrf.mxu0  ;;  %v955_v33 = vpop.f32.mrf.mxu1 }
  0xba   : > { %v775_v32 = vadd.f32 %v2414_v19, %v774_v30  ;;  %v956_v35 = vadd.f32 %v2419_v20, %v955_v33 }
  0xbb   : > { %v1336_v31 = vpack.c.bf16 %v893_v26, %v893_v26  ;;  %v1545_v34 = vpack.c.bf16 %v1135_v29, %v1135_v29 }
  0xbc   : > { %v1289_v36 = vpack.c.bf16 %v775_v32, %v775_v32  ;;  %v1418_v37 = vpack.c.bf16 %v956_v35, %v956_v35 }
  0xbd   : > { %1401 = vst.msk [vmem:[%s2427_s19 + $0xd0] sm:$0xf] %vm1348_vm1, %v1336_v31 }
  0xbe   : > { %1610 = vst.msk [vmem:[%s2456_s29 + $0x10] sm:$0xf] %vm1605_vm2, %v1545_v34 }
  0xbf   : > { %1354 = vst.msk [vmem:[%s2427_s19 + $0x14] sm:$0xf] %vm1348_vm1, %v1289_v36 }
  0xc0   : > { %1482 = vst.msk [vmem:[%s2434_s22 + $0x14] sm:$0xf] %vm1348_vm1, %v1418_v37  ;;  %v894_v38 = vpop.f32.mrf.mxu3  ;;  %v1136_v40 = vpop.f32.mrf.mxu2 }
  0xc1   : > { %v895_v39 = vadd.f32 %v2414_v19, %v894_v38  ;;  %v1137_v42 = vadd.f32 %v2444_v28, %v1136_v40  ;;  %v777_v43 = vpop.f32.mrf.mxu0  ;;  %v958_v46 = vpop.f32.mrf.mxu1  ;;  %v2128_v38 = vld [vmem:[%s2337_s28 + $0x68] sm:$0xff] }
  0xc2   : > { %v778_v45 = vadd.f32 %v2414_v19, %v777_v43  ;;  %v959_v48 = vadd.f32 %v2419_v20, %v958_v46 }
  0xc3   : > { %v1337_v44 = vpack.c.bf16 %v895_v39, %v895_v39  ;;  %v1546_v47 = vpack.c.bf16 %v1137_v42, %v1137_v42 }
  0xc4   : > { %v1290_v49 = vpack.c.bf16 %v778_v45, %v778_v45  ;;  %2020 = vmatmul.msk.bf16.gmra.mxu0 %vm656_vm0, %v2126_v41  ;;  %v1419_v50 = vpack.c.bf16 %v959_v48, %v959_v48  ;;  %2056 = vmatmul.msk.bf16.gmra.mxu1 %vm656_vm0, %v2126_v41 }
  0xc5   : > { %1402 = vst.msk [vmem:[%s2427_s19 + $0xd4] sm:$0xf] %vm1348_vm1, %v1337_v44  ;;  %2072 = vmatmul.msk.bf16.gmra.mxu3 %vm656_vm0, %v2368_v10  ;;  %2092 = vmatmul.msk.bf16.gmra.mxu2 %vm656_vm0, %v2126_v41 }
  0xc6   : > { %1611 = vst.msk [vmem:[%s2456_s29 + $0x14] sm:$0xf] %vm1605_vm2, %v1546_v47 }
  0xc7   : > { %1355 = vst.msk [vmem:[%s2427_s19 + $0x18] sm:$0xf] %vm1348_vm1, %v1290_v49 }
  0xc8   : > { %1483 = vst.msk [vmem:[%s2434_s22 + $0x18] sm:$0xf] %vm1348_vm1, %v1419_v50  ;;  %v897_v51 = vpop.f32.mrf.mxu3  ;;  %v1139_v53 = vpop.f32.mrf.mxu2 }
  0xc9   : > { %v898_v52 = vadd.f32 %v2414_v19, %v897_v51  ;;  %v1140_v54 = vadd.f32 %v2444_v28, %v1139_v53  ;;  %v779_v55 = vpop.f32.mrf.mxu0  ;;  %v960_v58 = vpop.f32.mrf.mxu1 }
  0xca   : > { %v780_v57 = vadd.f32 %v2414_v19, %v779_v55  ;;  %v961_v60 = vadd.f32 %v2419_v20, %v960_v58 }
  0xcb   : > { %v1338_v56 = vpack.c.bf16 %v898_v52, %v898_v52  ;;  %v1547_v59 = vpack.c.bf16 %v1140_v54, %v1140_v54 }
  0xcc   : > { %v1291_v61 = vpack.c.bf16 %v780_v57, %v780_v57  ;;  %v1420_v62 = vpack.c.bf16 %v961_v60, %v961_v60 }
  0xcd   : > { %1403 = vst.msk [vmem:[%s2427_s19 + $0xd8] sm:$0xf] %vm1348_vm1, %v1338_v56 }
  0xce   : > { %1612 = vst.msk [vmem:[%s2456_s29 + $0x18] sm:$0xf] %vm1605_vm2, %v1547_v59 }
  0xcf   : > { %1356 = vst.msk [vmem:[%s2427_s19 + $0x1c] sm:$0xf] %vm1348_vm1, %v1291_v61 }
  0xd0   : > { %1484 = vst.msk [vmem:[%s2434_s22 + $0x1c] sm:$0xf] %vm1348_vm1, %v1420_v62  ;;  %v899_v63 = vpop.f32.mrf.mxu3  ;;  %v1141_v1 = vpop.f32.mrf.mxu2  ;;  %v2129_v62 = vld [vmem:[%s2337_s28 + $0x70] sm:$0xff] }
  0xd1   : > { %v900_v0 = vadd.f32 %v2414_v19, %v899_v63  ;;  %v1142_v3 = vadd.f32 %v2444_v28, %v1141_v1  ;;  %v782_v5 = vpop.f32.mrf.mxu0  ;;  %v963_v11 = vpop.f32.mrf.mxu1 }
  0xd2   : > { %v783_v9 = vadd.f32 %v2414_v19, %v782_v5  ;;  %v964_v15 = vadd.f32 %v2419_v20, %v963_v11 }
  0xd3   : > { %v1339_v7 = vpack.c.bf16 %v900_v0, %v900_v0  ;;  %v1548_v13 = vpack.c.bf16 %v1142_v3, %v1142_v3 }
  0xd4   : > { %v1292_v17 = vpack.c.bf16 %v783_v9, %v783_v9  ;;  %2021 = vmatmul.msk.bf16.gmra.mxu0 %vm656_vm0, %v2127_v2  ;;  %v1421_v21 = vpack.c.bf16 %v964_v15, %v964_v15  ;;  %2057 = vmatmul.msk.bf16.gmra.mxu1 %vm656_vm0, %v2127_v2 }
  0xd5   : > { %1404 = vst.msk [vmem:[%s2427_s19 + $0xdc] sm:$0xf] %vm1348_vm1, %v1339_v7  ;;  %2073 = vmatmul.msk.bf16.gmra.mxu3 %vm656_vm0, %v2377_v12  ;;  %2093 = vmatmul.msk.bf16.gmra.mxu2 %vm656_vm0, %v2127_v2 }
  0xd6   : > { %1613 = vst.msk [vmem:[%s2456_s29 + $0x1c] sm:$0xf] %vm1605_vm2, %v1548_v13 }
  0xd7   : > { %1357 = vst.msk [vmem:[%s2427_s19 + $0x20] sm:$0xf] %vm1348_vm1, %v1292_v17 }
  0xd8   : > { %1485 = vst.msk [vmem:[%s2434_s22 + $0x20] sm:$0xf] %vm1348_vm1, %v1421_v21  ;;  %v902_v22 = vpop.f32.mrf.mxu3  ;;  %v1144_v24 = vpop.f32.mrf.mxu2 }
  0xd9   : > { %v903_v23 = vadd.f32 %v2414_v19, %v902_v22  ;;  %v1145_v25 = vadd.f32 %v2444_v28, %v1144_v24  ;;  %v784_v26 = vpop.f32.mrf.mxu0  ;;  %v965_v30 = vpop.f32.mrf.mxu1 }
  0xda   : > { %v785_v29 = vadd.f32 %v2414_v19, %v784_v26  ;;  %v966_v32 = vadd.f32 %v2419_v20, %v965_v30 }
  0xdb   : > { %v1340_v27 = vpack.c.bf16 %v903_v23, %v903_v23  ;;  %v1549_v31 = vpack.c.bf16 %v1145_v25, %v1145_v25 }
  0xdc   : > { %v1293_v33 = vpack.c.bf16 %v785_v29, %v785_v29  ;;  %v1422_v34 = vpack.c.bf16 %v966_v32, %v966_v32 }
  0xdd   : > { %1405 = vst.msk [vmem:[%s2427_s19 + $0xe0] sm:$0xf] %vm1348_vm1, %v1340_v27 }
  0xde   : > { %1614 = vst.msk [vmem:[%s2456_s29 + $0x20] sm:$0xf] %vm1605_vm2, %v1549_v31 }
  0xdf   : > { %1358 = vst.msk [vmem:[%s2427_s19 + $0x24] sm:$0xf] %vm1348_vm1, %v1293_v33  ;;  %v2130_v33 = vld [vmem:[%s2337_s28 + $0x78] sm:$0xff] }
  0xe0   : > { %1486 = vst.msk [vmem:[%s2434_s22 + $0x24] sm:$0xf] %vm1348_vm1, %v1422_v34  ;;  %v904_v35 = vpop.f32.mrf.mxu3  ;;  %v1146_v37 = vpop.f32.mrf.mxu2 }
  0xe1   : > { %v905_v36 = vadd.f32 %v2414_v19, %v904_v35  ;;  %v1147_v39 = vadd.f32 %v2444_v28, %v1146_v37  ;;  %v787_v40 = vpop.f32.mrf.mxu0  ;;  %v968_v43 = vpop.f32.mrf.mxu1 }
  0xe2   : > { %v788_v42 = vadd.f32 %v2414_v19, %v787_v40  ;;  %v969_v45 = vadd.f32 %v2419_v20, %v968_v43 }
  0xe3   : > { %v1341_v41 = vpack.c.bf16 %v905_v36, %v905_v36  ;;  %v1550_v44 = vpack.c.bf16 %v1147_v39, %v1147_v39 }
  0xe4   : > { %v1294_v46 = vpack.c.bf16 %v788_v42, %v788_v42  ;;  %2022 = vmatmul.msk.bf16.gmra.mxu0 %vm656_vm0, %v2128_v38  ;;  %v1423_v47 = vpack.c.bf16 %v969_v45, %v969_v45  ;;  %2058 = vmatmul.msk.bf16.gmra.mxu1 %vm656_vm0, %v2128_v38 }
  0xe5   : > { %1406 = vst.msk [vmem:[%s2427_s19 + $0xe4] sm:$0xf] %vm1348_vm1, %v1341_v41  ;;  %2074 = vmatmul.msk.bf16.gmra.mxu3 %vm656_vm0, %v2386_v14  ;;  %2094 = vmatmul.msk.bf16.gmra.mxu2 %vm656_vm0, %v2128_v38 }
  0xe6   : > { %1615 = vst.msk [vmem:[%s2456_s29 + $0x24] sm:$0xf] %vm1605_vm2, %v1550_v44 }
  0xe7   : > { %1359 = vst.msk [vmem:[%s2427_s19 + $0x28] sm:$0xf] %vm1348_vm1, %v1294_v46 }
  0xe8   : > { %1487 = vst.msk [vmem:[%s2434_s22 + $0x28] sm:$0xf] %vm1348_vm1, %v1423_v47  ;;  %v907_v48 = vpop.f32.mrf.mxu3  ;;  %v1149_v50 = vpop.f32.mrf.mxu2 }
  0xe9   : > { %v908_v49 = vadd.f32 %v2414_v19, %v907_v48  ;;  %v1150_v14 = vadd.f32 %v2444_v28, %v1149_v50  ;;  %v789_v51 = vpop.f32.mrf.mxu0  ;;  %v970_v54 = vpop.f32.mrf.mxu1 }
  0xea   : > { %v790_v53 = vadd.f32 %v2414_v19, %v789_v51  ;;  %v971_v56 = vadd.f32 %v2419_v20, %v970_v54 }
  0xeb   : > { %v1342_v52 = vpack.c.bf16 %v908_v49, %v908_v49  ;;  %v1551_v55 = vpack.c.bf16 %v1150_v14, %v1150_v14 }
  0xec   : > { %v1295_v57 = vpack.c.bf16 %v790_v53, %v790_v53  ;;  %v1424_v58 = vpack.c.bf16 %v971_v56, %v971_v56  ;;  %v2131_v56 = vld [vmem:[%s2337_s28 + $0x80] sm:$0xff] }
  0xed   : > { %1407 = vst.msk [vmem:[%s2427_s19 + $0xe8] sm:$0xf] %vm1348_vm1, %v1342_v52 }
  0xee   : > { %1616 = vst.msk [vmem:[%s2456_s29 + $0x28] sm:$0xf] %vm1605_vm2, %v1551_v55 }
  0xef   : > { %1360 = vst.msk [vmem:[%s2427_s19 + $0x2c] sm:$0xf] %vm1348_vm1, %v1295_v57 }
  0xf0   : > { %1488 = vst.msk [vmem:[%s2434_s22 + $0x2c] sm:$0xf] %vm1348_vm1, %v1424_v58  ;;  %v909_v59 = vpop.f32.mrf.mxu3  ;;  %v1151_v61 = vpop.f32.mrf.mxu2 }
  0xf1   : > { %v910_v60 = vadd.f32 %v2414_v19, %v909_v59  ;;  %v1152_v63 = vadd.f32 %v2444_v28, %v1151_v61  ;;  %v792_v0 = vpop.f32.mrf.mxu0  ;;  %v973_v3 = vpop.f32.mrf.mxu1 }
  0xf2   : > { %v793_v2 = vadd.f32 %v2414_v19, %v792_v0  ;;  %v974_v7 = vadd.f32 %v2419_v20, %v973_v3 }
  0xf3   : > { %v1343_v1 = vpack.c.bf16 %v910_v60, %v910_v60  ;;  %v1552_v5 = vpack.c.bf16 %v1152_v63, %v1152_v63 }
  0xf4   : > { %v1296_v9 = vpack.c.bf16 %v793_v2, %v793_v2  ;;  %2023 = vmatmul.msk.bf16.gmra.mxu0 %vm656_vm0, %v2129_v62  ;;  %v1425_v11 = vpack.c.bf16 %v974_v7, %v974_v7  ;;  %2059 = vmatmul.msk.bf16.gmra.mxu1 %vm656_vm0, %v2129_v62 }
  0xf5   : > { %1408 = vst.msk [vmem:[%s2427_s19 + $0xec] sm:$0xf] %vm1348_vm1, %v1343_v1  ;;  %2075 = vmatmul.msk.bf16.gmra.mxu3 %vm656_vm0, %v2395_v16  ;;  %2095 = vmatmul.msk.bf16.gmra.mxu2 %vm656_vm0, %v2129_v62 }
  0xf6   : > { %1617 = vst.msk [vmem:[%s2456_s29 + $0x2c] sm:$0xf] %vm1605_vm2, %v1552_v5 }
  0xf7   : > { %1361 = vst.msk [vmem:[%s2427_s19 + $0x30] sm:$0xf] %vm1348_vm1, %v1296_v9 }
  0xf8   : > { %1489 = vst.msk [vmem:[%s2434_s22 + $0x30] sm:$0xf] %vm1348_vm1, %v1425_v11  ;;  %v912_v13 = vpop.f32.mrf.mxu3  ;;  %v1154_v17 = vpop.f32.mrf.mxu2 }
  0xf9   : > { %v913_v15 = vadd.f32 %v2414_v19, %v912_v13  ;;  %v1155_v16 = vadd.f32 %v2444_v28, %v1154_v17  ;;  %v794_v21 = vpop.f32.mrf.mxu0  ;;  %v975_v24 = vpop.f32.mrf.mxu1 }
  0xfa   : > { %v795_v23 = vadd.f32 %v2414_v19, %v794_v21  ;;  %v976_v26 = vadd.f32 %v2419_v20, %v975_v24 }
  0xfb   : > { %v1344_v22 = vpack.c.bf16 %v913_v15, %v913_v15  ;;  %v1553_v25 = vpack.c.bf16 %v1155_v16, %v1155_v16 }
  0xfc   : > { %v1297_v27 = vpack.c.bf16 %v795_v23, %v795_v23  ;;  %v1426_v29 = vpack.c.bf16 %v976_v26, %v976_v26 }
  0xfd   : > { %1409 = vst.msk [vmem:[%s2427_s19 + $0xf0] sm:$0xf] %vm1348_vm1, %v1344_v22 }
  0xfe   : > { %1618 = vst.msk [vmem:[%s2456_s29 + $0x30] sm:$0xf] %vm1605_vm2, %v1553_v25  ;;  %v2132_v25 = vld [vmem:[%s2337_s28 + $0x88] sm:$0xff] }
  0xff   : > { %1362 = vst.msk [vmem:[%s2427_s19 + $0x34] sm:$0xf] %vm1348_vm1, %v1297_v27 }
 0x100   : > { %1490 = vst.msk [vmem:[%s2434_s22 + $0x34] sm:$0xf] %vm1348_vm1, %v1426_v29  ;;  %v914_v30 = vpop.f32.mrf.mxu3  ;;  %v1156_v32 = vpop.f32.mrf.mxu2 }
 0x101   : > { %v915_v31 = vadd.f32 %v2414_v19, %v914_v30  ;;  %v1157_v34 = vadd.f32 %v2444_v28, %v1156_v32  ;;  %v797_v35 = vpop.f32.mrf.mxu0  ;;  %v978_v38 = vpop.f32.mrf.mxu1 }
 0x102   : > { %v798_v37 = vadd.f32 %v2414_v19, %v797_v35  ;;  %v979_v40 = vadd.f32 %v2419_v20, %v978_v38 }
 0x103   : > { %v1345_v36 = vpack.c.bf16 %v915_v31, %v915_v31  ;;  %v1554_v39 = vpack.c.bf16 %v1157_v34, %v1157_v34 }
 0x104   : > { %v1298_v41 = vpack.c.bf16 %v798_v37, %v798_v37  ;;  %2024 = vmatmul.msk.bf16.gmra.mxu0 %vm656_vm0, %v2130_v33  ;;  %v1427_v42 = vpack.c.bf16 %v979_v40, %v979_v40  ;;  %2060 = vmatmul.msk.bf16.gmra.mxu1 %vm656_vm0, %v2130_v33 }
 0x105   : > { %1410 = vst.msk [vmem:[%s2427_s19 + $0xf4] sm:$0xf] %vm1348_vm1, %v1345_v36  ;;  %2076 = vmatmul.msk.bf16.gmra.mxu3 %vm656_vm0, %v2404_v18  ;;  %2096 = vmatmul.msk.bf16.gmra.mxu2 %vm656_vm0, %v2130_v33 }
 0x106   : > { %1619 = vst.msk [vmem:[%s2456_s29 + $0x34] sm:$0xf] %vm1605_vm2, %v1554_v39 }
 0x107   : > { %1363 = vst.msk [vmem:[%s2427_s19 + $0x38] sm:$0xf] %vm1348_vm1, %v1298_v41 }
 0x108   : > { %1491 = vst.msk [vmem:[%s2434_s22 + $0x38] sm:$0xf] %vm1348_vm1, %v1427_v42  ;;  %v917_v43 = vpop.f32.mrf.mxu3  ;;  %v1159_v45 = vpop.f32.mrf.mxu2 }
 0x109   : > { %v918_v44 = vadd.f32 %v2414_v19, %v917_v43  ;;  %v1160_v18 = vadd.f32 %v2444_v28, %v1159_v45  ;;  %v799_v46 = vpop.f32.mrf.mxu0  ;;  %v980_v49 = vpop.f32.mrf.mxu1 }
 0x10a   : > { %v800_v48 = vadd.f32 %v2414_v19, %v799_v46  ;;  %v981_v14 = vadd.f32 %v2419_v20, %v980_v49  ;;  %v2133_v49 = vld [vmem:[%s2337_s28 + $0x90] sm:$0xff] }
 0x10b   : > { %v1346_v47 = vpack.c.bf16 %v918_v44, %v918_v44  ;;  %v1555_v50 = vpack.c.bf16 %v1160_v18, %v1160_v18 }
 0x10c   : > { %v1299_v51 = vpack.c.bf16 %v800_v48, %v800_v48  ;;  %v1428_v52 = vpack.c.bf16 %v981_v14, %v981_v14 }
 0x10d   : > { %1411 = vst.msk [vmem:[%s2427_s19 + $0xf8] sm:$0xf] %vm1348_vm1, %v1346_v47 }
 0x10e   : > { %1620 = vst.msk [vmem:[%s2456_s29 + $0x38] sm:$0xf] %vm1605_vm2, %v1555_v50 }
 0x10f   : > { %1364 = vst.msk [vmem:[%s2427_s19 + $0x3c] sm:$0xf] %vm1348_vm1, %v1299_v51 }
 0x110   : > { %1492 = vst.msk [vmem:[%s2434_s22 + $0x3c] sm:$0xf] %vm1348_vm1, %v1428_v52  ;;  %v919_v53 = vpop.f32.mrf.mxu3  ;;  %v1161_v55 = vpop.f32.mrf.mxu2 }
 0x111   : > { %v920_v54 = vadd.f32 %v2414_v19, %v919_v53  ;;  %v1162_v57 = vadd.f32 %v2444_v28, %v1161_v55  ;;  %v802_v58 = vpop.f32.mrf.mxu0  ;;  %v983_v61 = vpop.f32.mrf.mxu1 }
 0x112   : > { %v803_v60 = vadd.f32 %v2414_v19, %v802_v58  ;;  %v984_v63 = vadd.f32 %v2419_v20, %v983_v61 }
 0x113   : > { %v1347_v59 = vpack.c.bf16 %v920_v54, %v920_v54  ;;  %v1556_v62 = vpack.c.bf16 %v1162_v57, %v1162_v57 }
 0x114   : > { %v1300_v0 = vpack.c.bf16 %v803_v60, %v803_v60  ;;  %2025 = vmatmul.msk.bf16.gmra.mxu0 %vm656_vm0, %v2131_v56  ;;  %v1429_v1 = vpack.c.bf16 %v984_v63, %v984_v63  ;;  %2061 = vmatmul.msk.bf16.gmra.mxu1 %vm656_vm0, %v2131_v56 }
 0x115   : > { %1412 = vst.msk [vmem:[%s2427_s19 + $0xfc] sm:$0xf] %vm1348_vm1, %v1347_v59  ;;  %2105 = vmatmul.msk.bf16.vlgmr.msra.gmra.mxu3 %vm656_vm0, %v2341_v4  ;;  %2097 = vmatmul.msk.bf16.gmra.mxu2 %vm656_vm0, %v2131_v56 }
 0x116   : > { %1621 = vst.msk [vmem:[%s2456_s29 + $0x3c] sm:$0xf] %vm1605_vm2, %v1556_v62 }
 0x117   : > { %1365 = vst.msk [vmem:[%s2427_s19 + $0x40] sm:$0xf] %vm1348_vm1, %v1300_v0 }
 0x118   : > { %1493 = vst.msk [vmem:[%s2434_s22 + $0x40] sm:$0xf] %vm1348_vm1, %v1429_v1  ;;  %v1063_v2 = vpop.f32.mrf.mxu3  ;;  %v1164_v5 = vpop.f32.mrf.mxu2 }
 0x119   : > { %v1064_v3 = vadd.f32 %v2419_v20, %v1063_v2  ;;  %v1165_v4 = vadd.f32 %v2444_v28, %v1164_v5  ;;  %v804_v7 = vpop.f32.mrf.mxu0  ;;  %v985_v13 = vpop.f32.mrf.mxu1 }
 0x11a   : > { %v805_v11 = vadd.f32 %v2414_v19, %v804_v7  ;;  %v986_v17 = vadd.f32 %v2419_v20, %v985_v13 }
 0x11b   : > { %v1461_v9 = vpack.c.bf16 %v1064_v3, %v1064_v3  ;;  %v1557_v15 = vpack.c.bf16 %v1165_v4, %v1165_v4 }
 0x11c   : > { %v1301_v16 = vpack.c.bf16 %v805_v11, %v805_v11  ;;  %v1430_v21 = vpack.c.bf16 %v986_v17, %v986_v17  ;;  %v2134_v11 = vld [vmem:[%s2337_s28 + $0x98] sm:$0xff] }
 0x11d   : > { %1525 = vst.msk [vmem:[%s2434_s22 + $0xc0] sm:$0xf] %vm1348_vm1, %v1461_v9 }
 0x11e   : > { %1622 = vst.msk [vmem:[%s2456_s29 + $0x40] sm:$0xf] %vm1605_vm2, %v1557_v15 }
 0x11f   : > { %1366 = vst.msk [vmem:[%s2427_s19 + $0x44] sm:$0xf] %vm1348_vm1, %v1301_v16 }
 0x120   : > { %1494 = vst.msk [vmem:[%s2434_s22 + $0x44] sm:$0xf] %vm1348_vm1, %v1430_v21  ;;  %v1065_v22 = vpop.f32.mrf.mxu3  ;;  %v1166_v24 = vpop.f32.mrf.mxu2 }
 0x121   : > { %v1066_v23 = vadd.f32 %v2419_v20, %v1065_v22  ;;  %v1167_v26 = vadd.f32 %v2444_v28, %v1166_v24  ;;  %v807_v27 = vpop.f32.mrf.mxu0  ;;  %v988_v31 = vpop.f32.mrf.mxu1 }
 0x122   : > { %v808_v30 = vadd.f32 %v2414_v19, %v807_v27  ;;  %v989_v33 = vadd.f32 %v2419_v20, %v988_v31 }
 0x123   : > { %v1462_v29 = vpack.c.bf16 %v1066_v23, %v1066_v23  ;;  %v1558_v32 = vpack.c.bf16 %v1167_v26, %v1167_v26 }
 0x124   : > { %v1302_v34 = vpack.c.bf16 %v808_v30, %v808_v30  ;;  %2026 = vmatmul.msk.bf16.gmra.mxu0 %vm656_vm0, %v2132_v25  ;;  %v1431_v35 = vpack.c.bf16 %v989_v33, %v989_v33  ;;  %2062 = vmatmul.msk.bf16.gmra.mxu1 %vm656_vm0, %v2132_v25 }
 0x125   : > { %1526 = vst.msk [vmem:[%s2434_s22 + $0xc4] sm:$0xf] %vm1348_vm1, %v1462_v29  ;;  %2106 = vmatmul.msk.bf16.gmra.mxu3 %vm656_vm0, %v2350_v6  ;;  %2098 = vmatmul.msk.bf16.gmra.mxu2 %vm656_vm0, %v2132_v25 }
 0x126   : > { %1623 = vst.msk [vmem:[%s2456_s29 + $0x44] sm:$0xf] %vm1605_vm2, %v1558_v32 }
 0x127   : > { %1367 = vst.msk [vmem:[%s2427_s19 + $0x48] sm:$0xf] %vm1348_vm1, %v1302_v34 }
 0x128   : > { %1495 = vst.msk [vmem:[%s2434_s22 + $0x48] sm:$0xf] %vm1348_vm1, %v1431_v35  ;;  %v1068_v36 = vpop.f32.mrf.mxu3  ;;  %v1169_v38 = vpop.f32.mrf.mxu2 }
 0x129   : > { %v1069_v37 = vadd.f32 %v2419_v20, %v1068_v36  ;;  %v1170_v6 = vadd.f32 %v2444_v28, %v1169_v38  ;;  %v809_v39 = vpop.f32.mrf.mxu0  ;;  %v990_v42 = vpop.f32.mrf.mxu1 }
 0x12a   : > { %v810_v41 = vadd.f32 %v2414_v19, %v809_v39  ;;  %v991_v44 = vadd.f32 %v2419_v20, %v990_v42 }
 0x12b   : > { %v1463_v40 = vpack.c.bf16 %v1069_v37, %v1069_v37  ;;  %v1559_v43 = vpack.c.bf16 %v1170_v6, %v1170_v6 }
 0x12c   : > { %v1303_v45 = vpack.c.bf16 %v810_v41, %v810_v41  ;;  %v1432_v18 = vpack.c.bf16 %v991_v44, %v991_v44 }
 0x12d   : > { %1527 = vst.msk [vmem:[%s2434_s22 + $0xc8] sm:$0xf] %vm1348_vm1, %v1463_v40  ;;  %v2135_v40 = vld [vmem:[%s2337_s28 + $0xa0] sm:$0xff] }
 0x12e   : > { %1624 = vst.msk [vmem:[%s2456_s29 + $0x48] sm:$0xf] %vm1605_vm2, %v1559_v43 }
 0x12f   : > { %1368 = vst.msk [vmem:[%s2427_s19 + $0x4c] sm:$0xf] %vm1348_vm1, %v1303_v45 }
 0x130   : > { %1496 = vst.msk [vmem:[%s2434_s22 + $0x4c] sm:$0xf] %vm1348_vm1, %v1432_v18  ;;  %v1070_v46 = vpop.f32.mrf.mxu3  ;;  %v1171_v48 = vpop.f32.mrf.mxu2 }
 0x131   : > { %v1071_v47 = vadd.f32 %v2419_v20, %v1070_v46  ;;  %v1172_v50 = vadd.f32 %v2444_v28, %v1171_v48  ;;  %v812_v14 = vpop.f32.mrf.mxu0  ;;  %v993_v53 = vpop.f32.mrf.mxu1 }
 0x132   : > { %v813_v52 = vadd.f32 %v2414_v19, %v812_v14  ;;  %v994_v55 = vadd.f32 %v2419_v20, %v993_v53 }
 0x133   : > { %v1464_v51 = vpack.c.bf16 %v1071_v47, %v1071_v47  ;;  %v1560_v54 = vpack.c.bf16 %v1172_v50, %v1172_v50 }
 0x134   : > { %v1304_v56 = vpack.c.bf16 %v813_v52, %v813_v52  ;;  %2027 = vmatmul.msk.bf16.gmra.mxu0 %vm656_vm0, %v2133_v49  ;;  %v1433_v57 = vpack.c.bf16 %v994_v55, %v994_v55  ;;  %2063 = vmatmul.msk.bf16.gmra.mxu1 %vm656_vm0, %v2133_v49 }
 0x135   : > { %1528 = vst.msk [vmem:[%s2434_s22 + $0xcc] sm:$0xf] %vm1348_vm1, %v1464_v51  ;;  %2107 = vmatmul.msk.bf16.gmra.mxu3 %vm656_vm0, %v2359_v8  ;;  %2099 = vmatmul.msk.bf16.gmra.mxu2 %vm656_vm0, %v2133_v49 }
 0x136   : > { %1625 = vst.msk [vmem:[%s2456_s29 + $0x4c] sm:$0xf] %vm1605_vm2, %v1560_v54 }
 0x137   : > { %1369 = vst.msk [vmem:[%s2427_s19 + $0x50] sm:$0xf] %vm1348_vm1, %v1304_v56 }
 0x138   : > { %1497 = vst.msk [vmem:[%s2434_s22 + $0x50] sm:$0xf] %vm1348_vm1, %v1433_v57  ;;  %v1073_v58 = vpop.f32.mrf.mxu3  ;;  %v1174_v60 = vpop.f32.mrf.mxu2 }
 0x139   : > { %v1074_v59 = vadd.f32 %v2419_v20, %v1073_v58  ;;  %v1175_v8 = vadd.f32 %v2444_v28, %v1174_v60  ;;  %v814_v61 = vpop.f32.mrf.mxu0  ;;  %v995_v0 = vpop.f32.mrf.mxu1 }
 0x13a   : > { %v815_v63 = vadd.f32 %v2414_v19, %v814_v61  ;;  %v996_v2 = vadd.f32 %v2419_v20, %v995_v0  ;;  %v2136_v61 = vld [vmem:[%s2337_s28 + $0xa8] sm:$0xff] }
 0x13b   : > { %v1465_v62 = vpack.c.bf16 %v1074_v59, %v1074_v59  ;;  %v1561_v1 = vpack.c.bf16 %v1175_v8, %v1175_v8 }
 0x13c   : > { %v1305_v3 = vpack.c.bf16 %v815_v63, %v815_v63  ;;  %v1434_v5 = vpack.c.bf16 %v996_v2, %v996_v2 }
 0x13d   : > { %1529 = vst.msk [vmem:[%s2434_s22 + $0xd0] sm:$0xf] %vm1348_vm1, %v1465_v62 }
 0x13e   : > { %1626 = vst.msk [vmem:[%s2456_s29 + $0x50] sm:$0xf] %vm1605_vm2, %v1561_v1 }
 0x13f   : > { %1370 = vst.msk [vmem:[%s2427_s19 + $0x54] sm:$0xf] %vm1348_vm1, %v1305_v3 }
 0x140   : > { %1498 = vst.msk [vmem:[%s2434_s22 + $0x54] sm:$0xf] %vm1348_vm1, %v1434_v5  ;;  %v1075_v4 = vpop.f32.mrf.mxu3  ;;  %v1176_v9 = vpop.f32.mrf.mxu2 }
 0x141   : > { %v1076_v7 = vadd.f32 %v2419_v20, %v1075_v4  ;;  %v1177_v13 = vadd.f32 %v2444_v28, %v1176_v9  ;;  %v817_v15 = vpop.f32.mrf.mxu0  ;;  %v998_v21 = vpop.f32.mrf.mxu1 }
 0x142   : > { %v818_v16 = vadd.f32 %v2414_v19, %v817_v15  ;;  %v999_v23 = vadd.f32 %v2419_v20, %v998_v21 }
 0x143   : > { %v1466_v17 = vpack.c.bf16 %v1076_v7, %v1076_v7  ;;  %v1562_v22 = vpack.c.bf16 %v1177_v13, %v1177_v13  ;;  %v2196_v7 = vld [vmem:[%s2337_s28 + $0xe8] sm:$0xff] }
 0x144   : > { %v1306_v24 = vpack.c.bf16 %v818_v16, %v818_v16  ;;  %2028 = vmatmul.msk.bf16.gmra.mxu0 %vm656_vm0, %v2134_v11  ;;  %v1435_v25 = vpack.c.bf16 %v999_v23, %v999_v23  ;;  %2064 = vmatmul.msk.bf16.gmra.mxu1 %vm656_vm0, %v2134_v11 }
 0x145   : > { %1530 = vst.msk [vmem:[%s2434_s22 + $0xd4] sm:$0xf] %vm1348_vm1, %v1466_v17  ;;  %2108 = vmatmul.msk.bf16.gmra.mxu3 %vm656_vm0, %v2368_v10  ;;  %2100 = vmatmul.msk.bf16.gmra.mxu2 %vm656_vm0, %v2134_v11 }
 0x146   : > { %1627 = vst.msk [vmem:[%s2456_s29 + $0x54] sm:$0xf] %vm1605_vm2, %v1562_v22 }
 0x147   : > { %1371 = vst.msk [vmem:[%s2427_s19 + $0x58] sm:$0xf] %vm1348_vm1, %v1306_v24 }
 0x148   : > { %1499 = vst.msk [vmem:[%s2434_s22 + $0x58] sm:$0xf] %vm1348_vm1, %v1435_v25  ;;  %v1078_v26 = vpop.f32.mrf.mxu3  ;;  %v1179_v29 = vpop.f32.mrf.mxu2 }
 0x149   : > { %v1079_v27 = vadd.f32 %v2419_v20, %v1078_v26  ;;  %v1180_v10 = vadd.f32 %v2444_v28, %v1179_v29  ;;  %v819_v30 = vpop.f32.mrf.mxu0  ;;  %v1000_v33 = vpop.f32.mrf.mxu1 }
 0x14a   : > { %v820_v32 = vadd.f32 %v2414_v19, %v819_v30  ;;  %v1001_v35 = vadd.f32 %v2419_v20, %v1000_v33  ;;  %v2137_v30 = vld [vmem:[%s2337_s28 + $0xb0] sm:$0xff] }
 0x14b   : > { %v1467_v31 = vpack.c.bf16 %v1079_v27, %v1079_v27  ;;  %v1563_v34 = vpack.c.bf16 %v1180_v10, %v1180_v10 }
 0x14c   : > { %v1307_v36 = vpack.c.bf16 %v820_v32, %v820_v32  ;;  %v1436_v37 = vpack.c.bf16 %v1001_v35, %v1001_v35 }
 0x14d   : > { %1531 = vst.msk [vmem:[%s2434_s22 + $0xd8] sm:$0xf] %vm1348_vm1, %v1467_v31 }
 0x14e   : > { %1628 = vst.msk [vmem:[%s2456_s29 + $0x58] sm:$0xf] %vm1605_vm2, %v1563_v34  ;;  %v2869_v34 = vld [vmem:[%s3150_s4] ss:$0 sm:$0xff] }
 0x14f   : > { %1372 = vst.msk [vmem:[%s2427_s19 + $0x5c] sm:$0xf] %vm1348_vm1, %v1307_v36 }
 0x150   : > { %1500 = vst.msk [vmem:[%s2434_s22 + $0x5c] sm:$0xf] %vm1348_vm1, %v1436_v37  ;;  %v1080_v38 = vpop.f32.mrf.mxu3  ;;  %v1181_v39 = vpop.f32.mrf.mxu2 }
 0x151   : > { %v1081_v6 = vadd.f32 %v2419_v20, %v1080_v38  ;;  %v1182_v41 = vadd.f32 %v2444_v28, %v1181_v39  ;;  %v822_v42 = vpop.f32.mrf.mxu0  ;;  %v1003_v45 = vpop.f32.mrf.mxu1 }
 0x152   : > { %v823_v44 = vadd.f32 %v2414_v19, %v822_v42  ;;  %v1004_v46 = vadd.f32 %v2419_v20, %v1003_v45 }
 0x153   : > { %v1468_v43 = vpack.c.bf16 %v1081_v6, %v1081_v6  ;;  %v1564_v18 = vpack.c.bf16 %v1182_v41, %v1182_v41 }
 0x154   : > { %v1308_v47 = vpack.c.bf16 %v823_v44, %v823_v44  ;;  %2029 = vmatmul.msk.bf16.gmra.mxu0 %vm656_vm0, %v2135_v40  ;;  %v1437_v48 = vpack.c.bf16 %v1004_v46, %v1004_v46  ;;  %2065 = vmatmul.msk.bf16.gmra.mxu1 %vm656_vm0, %v2135_v40 }
 0x155   : > { %1532 = vst.msk [vmem:[%s2434_s22 + $0xdc] sm:$0xf] %vm1348_vm1, %v1468_v43  ;;  %2109 = vmatmul.msk.bf16.gmra.mxu3 %vm656_vm0, %v2377_v12  ;;  %2101 = vmatmul.msk.bf16.gmra.mxu2 %vm656_vm0, %v2135_v40  ;;  %v2890_v43 = vld [vmem:[%s3152_s6] ss:$0 sm:$0xff] }
 0x156   : > { %1629 = vst.msk [vmem:[%s2456_s29 + $0x5c] sm:$0xf] %vm1605_vm2, %v1564_v18 }
 0x157   : > { %1373 = vst.msk [vmem:[%s2427_s19 + $0x60] sm:$0xf] %vm1348_vm1, %v1308_v47 }
 0x158   : > { %1501 = vst.msk [vmem:[%s2434_s22 + $0x60] sm:$0xf] %vm1348_vm1, %v1437_v48  ;;  %v1083_v49 = vpop.f32.mrf.mxu3  ;;  %v1184_v14 = vpop.f32.mrf.mxu2 }
 0x159   : > { %v1084_v50 = vadd.f32 %v2419_v20, %v1083_v49  ;;  %v1185_v12 = vadd.f32 %v2444_v28, %v1184_v14  ;;  %v824_v51 = vpop.f32.mrf.mxu0  ;;  %v1005_v54 = vpop.f32.mrf.mxu1 }
 0x15a   : > { %v825_v53 = vadd.f32 %v2414_v19, %v824_v51  ;;  %v1006_v56 = vadd.f32 %v2419_v20, %v1005_v54 }
 0x15b   : > { %v1469_v52 = vpack.c.bf16 %v1084_v50, %v1084_v50  ;;  %v1565_v55 = vpack.c.bf16 %v1185_v12, %v1185_v12 }
 0x15c   : > { %v1309_v57 = vpack.c.bf16 %v825_v53, %v825_v53  ;;  %v1438_v58 = vpack.c.bf16 %v1006_v56, %v1006_v56  ;;  %v2138_v53 = vld [vmem:[%s2337_s28 + $0xb8] sm:$0xff] }
 0x15d   : > { %1533 = vst.msk [vmem:[%s2434_s22 + $0xe0] sm:$0xf] %vm1348_vm1, %v1469_v52 }
 0x15e   : > { %1630 = vst.msk [vmem:[%s2456_s29 + $0x60] sm:$0xf] %vm1605_vm2, %v1565_v55 }
 0x15f   : > { %1374 = vst.msk [vmem:[%s2427_s19 + $0x64] sm:$0xf] %vm1348_vm1, %v1309_v57 }
 0x160   : > { %1502 = vst.msk [vmem:[%s2434_s22 + $0x64] sm:$0xf] %vm1348_vm1, %v1438_v58  ;;  %v1085_v59 = vpop.f32.mrf.mxu3  ;;  %v1186_v8 = vpop.f32.mrf.mxu2 }
 0x161   : > { %v1086_v60 = vadd.f32 %v2419_v20, %v1085_v59  ;;  %v1187_v62 = vadd.f32 %v2444_v28, %v1186_v8  ;;  %v827_v63 = vpop.f32.mrf.mxu0  ;;  %v1008_v2 = vpop.f32.mrf.mxu1 }
 0x162   : > { %v828_v1 = vadd.f32 %v2414_v19, %v827_v63  ;;  %v1009_v5 = vadd.f32 %v2419_v20, %v1008_v2 }
 0x163   : > { %v1470_v0 = vpack.c.bf16 %v1086_v60, %v1086_v60  ;;  %v1566_v3 = vpack.c.bf16 %v1187_v62, %v1187_v62 }
 0x164   : > { %v1310_v4 = vpack.c.bf16 %v828_v1, %v828_v1  ;;  %2030 = vmatmul.msk.bf16.gmra.mxu0 %vm656_vm0, %v2136_v61  ;;  %v1439_v9 = vpack.c.bf16 %v1009_v5, %v1009_v5  ;;  %2066 = vmatmul.msk.bf16.gmra.mxu1 %vm656_vm0, %v2136_v61 }
 0x165   : > { %1534 = vst.msk [vmem:[%s2434_s22 + $0xe4] sm:$0xf] %vm1348_vm1, %v1470_v0  ;;  %2110 = vmatmul.msk.bf16.gmra.mxu3 %vm656_vm0, %v2196_v7  ;;  %2102 = vmatmul.msk.bf16.gmra.mxu2 %vm656_vm0, %v2136_v61  ;;  %v2201_v61 = vld [vmem:[%s2337_s28 + $0xf8] sm:$0xff] }
 0x166   : > { %1631 = vst.msk [vmem:[%s2456_s29 + $0x64] sm:$0xf] %vm1605_vm2, %v1566_v3 }
 0x167   : > { %1375 = vst.msk [vmem:[%s2427_s19 + $0x68] sm:$0xf] %vm1348_vm1, %v1310_v4 }
 0x168   : > { %1503 = vst.msk [vmem:[%s2434_s22 + $0x68] sm:$0xf] %vm1348_vm1, %v1439_v9  ;;  %v1088_v11 = vpop.f32.mrf.mxu3  ;;  %v1189_v15 = vpop.f32.mrf.mxu2 }
 0x169   : > { %v1089_v13 = vadd.f32 %v2419_v20, %v1088_v11  ;;  %v1190_v17 = vadd.f32 %v2444_v28, %v1189_v15  ;;  %v829_v16 = vpop.f32.mrf.mxu0  ;;  %v1010_v23 = vpop.f32.mrf.mxu1 }
 0x16a   : > { %v830_v22 = vadd.f32 %v2414_v19, %v829_v16  ;;  %v1011_v25 = vadd.f32 %v2419_v20, %v1010_v23  ;;  %v2861_v19 = vld [vmem:[%s3151_s5] ss:$0 sm:$0xff] }
 0x16b   : > { %v1471_v21 = vpack.c.bf16 %v1089_v13, %v1089_v13  ;;  %v1567_v24 = vpack.c.bf16 %v1190_v17, %v1190_v17 }
 0x16c   : > { %v1311_v26 = vpack.c.bf16 %v830_v22, %v830_v22  ;;  %v1440_v27 = vpack.c.bf16 %v1011_v25, %v1011_v25 }
 0x16d   : > { %1535 = vst.msk [vmem:[%s2434_s22 + $0xe8] sm:$0xf] %vm1348_vm1, %v1471_v21 }
 0x16e   : > { %1632 = vst.msk [vmem:[%s2456_s29 + $0x68] sm:$0xf] %vm1605_vm2, %v1567_v24 }
 0x16f   : > { %1376 = vst.msk [vmem:[%s2427_s19 + $0x6c] sm:$0xf] %vm1348_vm1, %v1311_v26 }
 0x170   : > { %1504 = vst.msk [vmem:[%s2434_s22 + $0x6c] sm:$0xf] %vm1348_vm1, %v1440_v27  ;;  %v1090_v29 = vpop.f32.mrf.mxu3  ;;  %v1191_v10 = vpop.f32.mrf.mxu2 }
 0x171   : > { %v1091_v20 = vadd.f32 %v2861_v19, %v1090_v29  ;;  %v1192_v31 = vadd.f32 %v2444_v28, %v1191_v10  ;;  %v832_v32 = vpop.f32.mrf.mxu0  ;;  %v1013_v36 = vpop.f32.mrf.mxu1  ;;  %v2199_v28 = vld [vmem:[%s2337_s28 + $0xf0] sm:$0xff] }
 0x172   : > { %v833_v35 = vadd.f32 %v2869_v34, %v832_v32  ;;  %v1014_v38 = vadd.f32 %v2861_v19, %v1013_v36 }
 0x173   : > { %v1472_v33 = vpack.c.bf16 %v1091_v20, %v1091_v20  ;;  %v1568_v37 = vpack.c.bf16 %v1192_v31, %v1192_v31 }
 0x174   : > { %v1312_v6 = vpack.c.bf16 %v833_v35, %v833_v35  ;;  %2031 = vmatmul.msk.bf16.gmra.mxu0 %vm656_vm0, %v2137_v30  ;;  %v1441_v39 = vpack.c.bf16 %v1014_v38, %v1014_v38  ;;  %2067 = vmatmul.msk.bf16.gmra.mxu1 %vm656_vm0, %v2137_v30 }
 0x175   : > { %1536 = vst.msk [vmem:[%s2434_s22 + $0xec] sm:$0xf] %vm1348_vm1, %v1472_v33  ;;  %2111 = vmatmul.msk.bf16.gmra.mxu3 %vm656_vm0, %v2199_v28  ;;  %2103 = vmatmul.msk.bf16.gmra.mxu2 %vm656_vm0, %v2137_v30 }
 0x176   : > { %1633 = vst.msk [vmem:[%s2456_s29 + $0x6c] sm:$0xf] %vm1605_vm2, %v1568_v37 }
 0x177   : > { %1377 = vst.msk [vmem:[%s2427_s19 + $0x70] sm:$0xf] %vm1348_vm1, %v1312_v6 }
 0x178   : > { %1505 = vst.msk [vmem:[%s2434_s22 + $0x70] sm:$0xf] %vm1348_vm1, %v1441_v39  ;;  %v1093_v40 = vpop.f32.mrf.mxu3  ;;  %v1194_v42 = vpop.f32.mrf.mxu2 }
 0x179   : > { %v1094_v41 = vadd.f32 %v2861_v19, %v1093_v40  ;;  %v1195_v44 = vadd.f32 %v2890_v43, %v1194_v42  ;;  %v834_v45 = vpop.f32.mrf.mxu0  ;;  %v1015_v47 = vpop.f32.mrf.mxu1 }
 0x17a   : > { %v835_v46 = vadd.f32 %v2869_v34, %v834_v45  ;;  %v1016_v49 = vadd.f32 %v2861_v19, %v1015_v47 }
 0x17b   : > { %v1473_v18 = vpack.c.bf16 %v1094_v41, %v1094_v41  ;;  %v1569_v48 = vpack.c.bf16 %v1195_v44, %v1195_v44 }
 0x17c   : > { %v1313_v50 = vpack.c.bf16 %v835_v46, %v835_v46  ;;  %v1442_v14 = vpack.c.bf16 %v1016_v49, %v1016_v49 }
 0x17d   : > { %1537 = vst.msk [vmem:[%s2434_s22 + $0xf0] sm:$0xf] %vm1348_vm1, %v1473_v18 }
 0x17e   : > { %1634 = vst.msk [vmem:[%s2456_s29 + $0x70] sm:$0xf] %vm1605_vm2, %v1569_v48 }
 0x17f   : > { %1378 = vst.msk [vmem:[%s2427_s19 + $0x74] sm:$0xf] %vm1348_vm1, %v1313_v50 }
 0x180   : > { %1506 = vst.msk [vmem:[%s2434_s22 + $0x74] sm:$0xf] %vm1348_vm1, %v1442_v14  ;;  %v1095_v12 = vpop.f32.mrf.mxu3  ;;  %v1196_v52 = vpop.f32.mrf.mxu2 }
 0x181   : > { %v1096_v51 = vadd.f32 %v2861_v19, %v1095_v12  ;;  %v1197_v54 = vadd.f32 %v2890_v43, %v1196_v52  ;;  %v837_v55 = vpop.f32.mrf.mxu0  ;;  %v1018_v58 = vpop.f32.mrf.mxu1 }
 0x182   : > { %v838_v57 = vadd.f32 %v2869_v34, %v837_v55  ;;  %v1019_v60 = vadd.f32 %v2861_v19, %v1018_v58 }
 0x183   : > { %v1474_v56 = vpack.c.bf16 %v1096_v51, %v1096_v51  ;;  %v1570_v59 = vpack.c.bf16 %v1197_v54, %v1197_v54 }
 0x184   : > { %v1314_v8 = vpack.c.bf16 %v838_v57, %v838_v57  ;;  %2032 = vmatmul.msk.bf16.gmra.mxu0 %vm656_vm0, %v2138_v53  ;;  %v1443_v62 = vpack.c.bf16 %v1019_v60, %v1019_v60  ;;  %2068 = vmatmul.msk.bf16.gmra.mxu1 %vm656_vm0, %v2138_v53 }
 0x185   : > { %1538 = vst.msk [vmem:[%s2434_s22 + $0xf4] sm:$0xf] %vm1348_vm1, %v1474_v56  ;;  %2112 = vmatmul.msk.bf16.gmra.mxu3 %vm656_vm0, %v2201_v61  ;;  %2104 = vmatmul.msk.bf16.gmra.mxu2 %vm656_vm0, %v2138_v53 }
 0x186   : > { %1635 = vst.msk [vmem:[%s2456_s29 + $0x74] sm:$0xf] %vm1605_vm2, %v1570_v59 }
 0x187   : > { %1379 = vst.msk [vmem:[%s2427_s19 + $0x78] sm:$0xf] %vm1348_vm1, %v1314_v8 }
 0x188   : > { %1507 = vst.msk [vmem:[%s2434_s22 + $0x78] sm:$0xf] %vm1348_vm1, %v1443_v62  ;;  %v1098_v63 = vpop.f32.mrf.mxu3  ;;  %v1199_v1 = vpop.f32.mrf.mxu2 }
 0x189   : > { %v1099_v0 = vadd.f32 %v2861_v19, %v1098_v63  ;;  %v1200_v2 = vadd.f32 %v2890_v43, %v1199_v1  ;;  %v839_v3 = vpop.f32.mrf.mxu0  ;;  %v1020_v7 = vpop.f32.mrf.mxu1 }
 0x18a   : > { %v840_v4 = vadd.f32 %v2869_v34, %v839_v3  ;;  %v1021_v11 = vadd.f32 %v2861_v19, %v1020_v7 }
 0x18b   : > { %v1475_v5 = vpack.c.bf16 %v1099_v0, %v1099_v0  ;;  %v1571_v9 = vpack.c.bf16 %v1200_v2, %v1200_v2 }
 0x18c   : > { %v1315_v13 = vpack.c.bf16 %v840_v4, %v840_v4  ;;  %v1444_v15 = vpack.c.bf16 %v1021_v11, %v1021_v11 }
 0x18d   : > { %1539 = vst.msk [vmem:[%s2434_s22 + $0xf8] sm:$0xf] %vm1348_vm1, %v1475_v5 }
 0x18e   : > { %1636 = vst.msk [vmem:[%s2456_s29 + $0x78] sm:$0xf] %vm1605_vm2, %v1571_v9 }
 0x18f   : > { %1380 = vst.msk [vmem:[%s2427_s19 + $0x7c] sm:$0xf] %vm1348_vm1, %v1315_v13 }
 0x190   : > { %1508 = vst.msk [vmem:[%s2434_s22 + $0x7c] sm:$0xf] %vm1348_vm1, %v1444_v15  ;;  %v1100_v17 = vpop.f32.mrf.mxu3  ;;  %v1201_v21 = vpop.f32.mrf.mxu2 }
 0x191   : > { %v1101_v16 = vadd.f32 %v2861_v19, %v1100_v17  ;;  %v1202_v22 = vadd.f32 %v2890_v43, %v1201_v21  ;;  %v842_v23 = vpop.f32.mrf.mxu0  ;;  %v1023_v26 = vpop.f32.mrf.mxu1 }
 0x192   : > { %v843_v25 = vadd.f32 %v2869_v34, %v842_v23  ;;  %v1024_v29 = vadd.f32 %v2861_v19, %v1023_v26 }
 0x193   : > { %v1476_v24 = vpack.c.bf16 %v1101_v16, %v1101_v16  ;;  %v1572_v27 = vpack.c.bf16 %v1202_v22, %v1202_v22 }
 0x194   : > { %v1316_v20 = vpack.c.bf16 %v843_v25, %v843_v25  ;;  %v1445_v10 = vpack.c.bf16 %v1024_v29, %v1024_v29 }
 0x195   : > { %1540 = vst.msk [vmem:[%s2434_s22 + $0xfc] sm:$0xf] %vm1348_vm1, %v1476_v24 }
 0x196   : > { %1637 = vst.msk [vmem:[%s2456_s29 + $0x7c] sm:$0xf] %vm1605_vm2, %v1572_v27 }
 0x197   : > { %1381 = vst.msk [vmem:[%s2427_s19 + $0x80] sm:$0xf] %vm1348_vm1, %v1316_v20 }
 0x198   : > { %1509 = vst.msk [vmem:[%s2434_s22 + $0x80] sm:$0xf] %vm1348_vm1, %v1445_v10  ;;  %v1244_v30 = vpop.f32.mrf.mxu3  ;;  %v1204_v31 = vpop.f32.mrf.mxu2 }
 0x199   : > { %v1245_v32 = vadd.f32 %v2890_v43, %v1244_v30  ;;  %v1205_v33 = vadd.f32 %v2890_v43, %v1204_v31  ;;  %v844_v35 = vpop.f32.mrf.mxu0  ;;  %v1025_v38 = vpop.f32.mrf.mxu1 }
 0x19a   : > { %v845_v37 = vadd.f32 %v2869_v34, %v844_v35  ;;  %v1026_v28 = vadd.f32 %v2861_v19, %v1025_v38 }
 0x19b   : > { %v1589_v36 = vpack.c.bf16 %v1245_v32, %v1245_v32  ;;  %v1573_v6 = vpack.c.bf16 %v1205_v33, %v1205_v33 }
 0x19c   : > { %v1317_v39 = vpack.c.bf16 %v845_v37, %v845_v37  ;;  %v1446_v40 = vpack.c.bf16 %v1026_v28, %v1026_v28 }
 0x19d   : > { %1654 = vst.msk [vmem:[%s2456_s29 + $0xc0] sm:$0xf] %vm1605_vm2, %v1589_v36 }
 0x19e   : > { %1638 = vst.msk [vmem:[%s2456_s29 + $0x80] sm:$0xf] %vm1605_vm2, %v1573_v6 }
 0x19f   : > { %1382 = vst.msk [vmem:[%s2427_s19 + $0x84] sm:$0xf] %vm1348_vm1, %v1317_v39 }
 0x1a0   : > { %1510 = vst.msk [vmem:[%s2434_s22 + $0x84] sm:$0xf] %vm1348_vm1, %v1446_v40  ;;  %v1246_v41 = vpop.f32.mrf.mxu3  ;;  %v1206_v42 = vpop.f32.mrf.mxu2 }
 0x1a1   : > { %v1247_v44 = vadd.f32 %v2890_v43, %v1246_v41  ;;  %v1207_v45 = vadd.f32 %v2890_v43, %v1206_v42  ;;  %v847_v18 = vpop.f32.mrf.mxu0  ;;  %v1028_v48 = vpop.f32.mrf.mxu1 }
 0x1a2   : > { %v848_v47 = vadd.f32 %v2869_v34, %v847_v18  ;;  %v1029_v50 = vadd.f32 %v2861_v19, %v1028_v48 }
 0x1a3   : > { %v1590_v46 = vpack.c.bf16 %v1247_v44, %v1247_v44  ;;  %v1574_v49 = vpack.c.bf16 %v1207_v45, %v1207_v45 }
 0x1a4   : > { %v1318_v14 = vpack.c.bf16 %v848_v47, %v848_v47  ;;  %v1447_v12 = vpack.c.bf16 %v1029_v50, %v1029_v50 }
 0x1a5   : > { %1655 = vst.msk [vmem:[%s2456_s29 + $0xc4] sm:$0xf] %vm1605_vm2, %v1590_v46 }
 0x1a6   : > { %1639 = vst.msk [vmem:[%s2456_s29 + $0x84] sm:$0xf] %vm1605_vm2, %v1574_v49 }
 0x1a7   : > { %1383 = vst.msk [vmem:[%s2427_s19 + $0x88] sm:$0xf] %vm1348_vm1, %v1318_v14 }
 0x1a8   : > { %1511 = vst.msk [vmem:[%s2434_s22 + $0x88] sm:$0xf] %vm1348_vm1, %v1447_v12  ;;  %v1249_v51 = vpop.f32.mrf.mxu3  ;;  %v1209_v52 = vpop.f32.mrf.mxu2 }
 0x1a9   : > { %v1250_v53 = vadd.f32 %v2890_v43, %v1249_v51  ;;  %v1210_v54 = vadd.f32 %v2890_v43, %v1209_v52  ;;  %v849_v55 = vpop.f32.mrf.mxu0  ;;  %v1030_v58 = vpop.f32.mrf.mxu1 }
 0x1aa   : > { %v850_v57 = vadd.f32 %v2869_v34, %v849_v55  ;;  %v1031_v60 = vadd.f32 %v2861_v19, %v1030_v58 }
 0x1ab   : > { %v1591_v56 = vpack.c.bf16 %v1250_v53, %v1250_v53  ;;  %v1575_v59 = vpack.c.bf16 %v1210_v54, %v1210_v54 }
 0x1ac   : > { %v1319_v8 = vpack.c.bf16 %v850_v57, %v850_v57  ;;  %v1448_v61 = vpack.c.bf16 %v1031_v60, %v1031_v60 }
 0x1ad   : > { %1656 = vst.msk [vmem:[%s2456_s29 + $0xc8] sm:$0xf] %vm1605_vm2, %v1591_v56 }
 0x1ae   : > { %1640 = vst.msk [vmem:[%s2456_s29 + $0x88] sm:$0xf] %vm1605_vm2, %v1575_v59 }
 0x1af   : > { %1384 = vst.msk [vmem:[%s2427_s19 + $0x8c] sm:$0xf] %vm1348_vm1, %v1319_v8 }
 0x1b0   : > { %1512 = vst.msk [vmem:[%s2434_s22 + $0x8c] sm:$0xf] %vm1348_vm1, %v1448_v61  ;;  %v1251_v62 = vpop.f32.mrf.mxu3  ;;  %v1211_v63 = vpop.f32.mrf.mxu2 }
 0x1b1   : > { %v1252_v0 = vadd.f32 %v2890_v43, %v1251_v62  ;;  %v1212_v1 = vadd.f32 %v2890_v43, %v1211_v63  ;;  %v852_v2 = vpop.f32.mrf.mxu0  ;;  %v1033_v4 = vpop.f32.mrf.mxu1 }
 0x1b2   : > { %v853_v5 = vadd.f32 %v2869_v34, %v852_v2  ;;  %v1034_v9 = vadd.f32 %v2861_v19, %v1033_v4 }
 0x1b3   : > { %v1592_v3 = vpack.c.bf16 %v1252_v0, %v1252_v0  ;;  %v1576_v7 = vpack.c.bf16 %v1212_v1, %v1212_v1 }
 0x1b4   : > { %v1320_v11 = vpack.c.bf16 %v853_v5, %v853_v5  ;;  %v1449_v13 = vpack.c.bf16 %v1034_v9, %v1034_v9 }
 0x1b5   : > { %1657 = vst.msk [vmem:[%s2456_s29 + $0xcc] sm:$0xf] %vm1605_vm2, %v1592_v3 }
 0x1b6   : > { %1641 = vst.msk [vmem:[%s2456_s29 + $0x8c] sm:$0xf] %vm1605_vm2, %v1576_v7 }
 0x1b7   : > { %1385 = vst.msk [vmem:[%s2427_s19 + $0x90] sm:$0xf] %vm1348_vm1, %v1320_v11 }
 0x1b8   : > { %1513 = vst.msk [vmem:[%s2434_s22 + $0x90] sm:$0xf] %vm1348_vm1, %v1449_v13  ;;  %v1254_v15 = vpop.f32.mrf.mxu3  ;;  %v1214_v17 = vpop.f32.mrf.mxu2 }
 0x1b9   : > { %v1255_v16 = vadd.f32 %v2890_v43, %v1254_v15  ;;  %v1215_v21 = vadd.f32 %v2890_v43, %v1214_v17  ;;  %v854_v22 = vpop.f32.mrf.mxu0  ;;  %v1035_v25 = vpop.f32.mrf.mxu1 }
 0x1ba   : > { %v855_v24 = vadd.f32 %v2869_v34, %v854_v22  ;;  %v1036_v27 = vadd.f32 %v2861_v19, %v1035_v25 }
 0x1bb   : > { %v1593_v23 = vpack.c.bf16 %v1255_v16, %v1255_v16  ;;  %v1577_v26 = vpack.c.bf16 %v1215_v21, %v1215_v21 }
 0x1bc   : > { %v1321_v29 = vpack.c.bf16 %v855_v24, %v855_v24  ;;  %v1450_v20 = vpack.c.bf16 %v1036_v27, %v1036_v27 }
 0x1bd   : > { %1658 = vst.msk [vmem:[%s2456_s29 + $0xd0] sm:$0xf] %vm1605_vm2, %v1593_v23 }
 0x1be   : > { %1642 = vst.msk [vmem:[%s2456_s29 + $0x90] sm:$0xf] %vm1605_vm2, %v1577_v26 }
 0x1bf   : > { %1386 = vst.msk [vmem:[%s2427_s19 + $0x94] sm:$0xf] %vm1348_vm1, %v1321_v29 }
 0x1c0   : > { %1514 = vst.msk [vmem:[%s2434_s22 + $0x94] sm:$0xf] %vm1348_vm1, %v1450_v20  ;;  %v1256_v10 = vpop.f32.mrf.mxu3  ;;  %v1216_v30 = vpop.f32.mrf.mxu2 }
 0x1c1   : > { %v1257_v31 = vadd.f32 %v2890_v43, %v1256_v10  ;;  %v1217_v32 = vadd.f32 %v2890_v43, %v1216_v30  ;;  %v857_v33 = vpop.f32.mrf.mxu0  ;;  %v1038_v37 = vpop.f32.mrf.mxu1 }
 0x1c2   : > { %v858_v36 = vadd.f32 %v2869_v34, %v857_v33  ;;  %v1039_v6 = vadd.f32 %v2861_v19, %v1038_v37 }
 0x1c3   : > { %v1594_v35 = vpack.c.bf16 %v1257_v31, %v1257_v31  ;;  %v1578_v38 = vpack.c.bf16 %v1217_v32, %v1217_v32 }
 0x1c4   : > { %v1322_v28 = vpack.c.bf16 %v858_v36, %v858_v36  ;;  %v1451_v39 = vpack.c.bf16 %v1039_v6, %v1039_v6 }
 0x1c5   : > { %1659 = vst.msk [vmem:[%s2456_s29 + $0xd4] sm:$0xf] %vm1605_vm2, %v1594_v35 }
 0x1c6   : > { %1643 = vst.msk [vmem:[%s2456_s29 + $0x94] sm:$0xf] %vm1605_vm2, %v1578_v38 }
 0x1c7   : > { %1387 = vst.msk [vmem:[%s2427_s19 + $0x98] sm:$0xf] %vm1348_vm1, %v1322_v28 }
 0x1c8   : > { %1515 = vst.msk [vmem:[%s2434_s22 + $0x98] sm:$0xf] %vm1348_vm1, %v1451_v39  ;;  %v1259_v40 = vpop.f32.mrf.mxu3  ;;  %v1219_v41 = vpop.f32.mrf.mxu2 }
 0x1c9   : > { %v1260_v42 = vadd.f32 %v2890_v43, %v1259_v40  ;;  %v1220_v44 = vadd.f32 %v2890_v43, %v1219_v41  ;;  %v859_v45 = vpop.f32.mrf.mxu0  ;;  %v1040_v47 = vpop.f32.mrf.mxu1 }
 0x1ca   : > { %v860_v46 = vadd.f32 %v2869_v34, %v859_v45  ;;  %v1041_v49 = vadd.f32 %v2861_v19, %v1040_v47 }
 0x1cb   : > { %v1595_v18 = vpack.c.bf16 %v1260_v42, %v1260_v42  ;;  %v1579_v48 = vpack.c.bf16 %v1220_v44, %v1220_v44 }
 0x1cc   : > { %v1323_v50 = vpack.c.bf16 %v860_v46, %v860_v46  ;;  %v1452_v14 = vpack.c.bf16 %v1041_v49, %v1041_v49 }
 0x1cd   : > { %1660 = vst.msk [vmem:[%s2456_s29 + $0xd8] sm:$0xf] %vm1605_vm2, %v1595_v18 }
 0x1ce   : > { %1644 = vst.msk [vmem:[%s2456_s29 + $0x98] sm:$0xf] %vm1605_vm2, %v1579_v48 }
 0x1cf   : > { %1388 = vst.msk [vmem:[%s2427_s19 + $0x9c] sm:$0xf] %vm1348_vm1, %v1323_v50 }
 0x1d0   : > { %1516 = vst.msk [vmem:[%s2434_s22 + $0x9c] sm:$0xf] %vm1348_vm1, %v1452_v14  ;;  %v1261_v12 = vpop.f32.mrf.mxu3  ;;  %v1221_v51 = vpop.f32.mrf.mxu2 }
 0x1d1   : > { %v1262_v52 = vadd.f32 %v2890_v43, %v1261_v12  ;;  %v1222_v53 = vadd.f32 %v2890_v43, %v1221_v51  ;;  %v862_v54 = vpop.f32.mrf.mxu0  ;;  %v1043_v57 = vpop.f32.mrf.mxu1 }
 0x1d2   : > { %v863_v56 = vadd.f32 %v2869_v34, %v862_v54  ;;  %v1044_v59 = vadd.f32 %v2861_v19, %v1043_v57 }
 0x1d3   : > { %v1596_v55 = vpack.c.bf16 %v1262_v52, %v1262_v52  ;;  %v1580_v58 = vpack.c.bf16 %v1222_v53, %v1222_v53 }
 0x1d4   : > { %v1324_v60 = vpack.c.bf16 %v863_v56, %v863_v56  ;;  %v1453_v8 = vpack.c.bf16 %v1044_v59, %v1044_v59 }
 0x1d5   : > { %1661 = vst.msk [vmem:[%s2456_s29 + $0xdc] sm:$0xf] %vm1605_vm2, %v1596_v55 }
 0x1d6   : > { %1645 = vst.msk [vmem:[%s2456_s29 + $0x9c] sm:$0xf] %vm1605_vm2, %v1580_v58 }
 0x1d7   : > { %1389 = vst.msk [vmem:[%s2427_s19 + $0xa0] sm:$0xf] %vm1348_vm1, %v1324_v60 }
 0x1d8   : > { %1517 = vst.msk [vmem:[%s2434_s22 + $0xa0] sm:$0xf] %vm1348_vm1, %v1453_v8  ;;  %v1264_v61 = vpop.f32.mrf.mxu3  ;;  %v1224_v62 = vpop.f32.mrf.mxu2 }
 0x1d9   : > { %v1265_v63 = vadd.f32 %v2890_v43, %v1264_v61  ;;  %v1225_v0 = vadd.f32 %v2890_v43, %v1224_v62  ;;  %v864_v1 = vpop.f32.mrf.mxu0  ;;  %v1045_v5 = vpop.f32.mrf.mxu1 }
 0x1da   : > { %v865_v3 = vadd.f32 %v2869_v34, %v864_v1  ;;  %v1046_v7 = vadd.f32 %v2861_v19, %v1045_v5 }
 0x1db   : > { %v1597_v2 = vpack.c.bf16 %v1265_v63, %v1265_v63  ;;  %v1581_v4 = vpack.c.bf16 %v1225_v0, %v1225_v0 }
 0x1dc   : > { %v1325_v9 = vpack.c.bf16 %v865_v3, %v865_v3  ;;  %v1454_v11 = vpack.c.bf16 %v1046_v7, %v1046_v7 }
 0x1dd   : > { %1662 = vst.msk [vmem:[%s2456_s29 + $0xe0] sm:$0xf] %vm1605_vm2, %v1597_v2 }
 0x1de   : > { %1646 = vst.msk [vmem:[%s2456_s29 + $0xa0] sm:$0xf] %vm1605_vm2, %v1581_v4 }
 0x1df   : > { %1390 = vst.msk [vmem:[%s2427_s19 + $0xa4] sm:$0xf] %vm1348_vm1, %v1325_v9 }
 0x1e0   : > { %1518 = vst.msk [vmem:[%s2434_s22 + $0xa4] sm:$0xf] %vm1348_vm1, %v1454_v11  ;;  %v1266_v13 = vpop.f32.mrf.mxu3  ;;  %v1226_v15 = vpop.f32.mrf.mxu2 }
 0x1e1   : > { %v1267_v17 = vadd.f32 %v2890_v43, %v1266_v13  ;;  %v1227_v16 = vadd.f32 %v2890_v43, %v1226_v15  ;;  %v867_v21 = vpop.f32.mrf.mxu0  ;;  %v1048_v24 = vpop.f32.mrf.mxu1 }
 0x1e2   : > { %v868_v23 = vadd.f32 %v2869_v34, %v867_v21  ;;  %v1049_v26 = vadd.f32 %v2861_v19, %v1048_v24 }
 0x1e3   : > { %v1598_v22 = vpack.c.bf16 %v1267_v17, %v1267_v17  ;;  %v1582_v25 = vpack.c.bf16 %v1227_v16, %v1227_v16 }
 0x1e4   : > { %v1326_v27 = vpack.c.bf16 %v868_v23, %v868_v23  ;;  %v1455_v29 = vpack.c.bf16 %v1049_v26, %v1049_v26 }
 0x1e5   : > { %1663 = vst.msk [vmem:[%s2456_s29 + $0xe4] sm:$0xf] %vm1605_vm2, %v1598_v22 }
 0x1e6   : > { %1647 = vst.msk [vmem:[%s2456_s29 + $0xa4] sm:$0xf] %vm1605_vm2, %v1582_v25 }
 0x1e7   : > { %1391 = vst.msk [vmem:[%s2427_s19 + $0xa8] sm:$0xf] %vm1348_vm1, %v1326_v27 }
 0x1e8   : > { %1519 = vst.msk [vmem:[%s2434_s22 + $0xa8] sm:$0xf] %vm1348_vm1, %v1455_v29  ;;  %v1269_v20 = vpop.f32.mrf.mxu3  ;;  %v1229_v10 = vpop.f32.mrf.mxu2 }
 0x1e9   : > { %v1270_v30 = vadd.f32 %v2890_v43, %v1269_v20  ;;  %v1230_v31 = vadd.f32 %v2890_v43, %v1229_v10  ;;  %v869_v32 = vpop.f32.mrf.mxu0  ;;  %v1050_v36 = vpop.f32.mrf.mxu1 }
 0x1ea   : > { %v870_v35 = vadd.f32 %v2869_v34, %v869_v32  ;;  %v1051_v38 = vadd.f32 %v2861_v19, %v1050_v36 }
 0x1eb   : > { %v1599_v33 = vpack.c.bf16 %v1270_v30, %v1270_v30  ;;  %v1583_v37 = vpack.c.bf16 %v1230_v31, %v1230_v31 }
 0x1ec   : > { %v1327_v6 = vpack.c.bf16 %v870_v35, %v870_v35  ;;  %v1456_v28 = vpack.c.bf16 %v1051_v38, %v1051_v38 }
 0x1ed   : > { %1664 = vst.msk [vmem:[%s2456_s29 + $0xe8] sm:$0xf] %vm1605_vm2, %v1599_v33 }
 0x1ee   : > { %1648 = vst.msk [vmem:[%s2456_s29 + $0xa8] sm:$0xf] %vm1605_vm2, %v1583_v37 }
 0x1ef   : > { %1392 = vst.msk [vmem:[%s2427_s19 + $0xac] sm:$0xf] %vm1348_vm1, %v1327_v6 }
 0x1f0   : > { %1520 = vst.msk [vmem:[%s2434_s22 + $0xac] sm:$0xf] %vm1348_vm1, %v1456_v28  ;;  %v1271_v39 = vpop.f32.mrf.mxu3  ;;  %v1231_v40 = vpop.f32.mrf.mxu2 }
 0x1f1   : > { %v1272_v41 = vadd.f32 %v2890_v43, %v1271_v39  ;;  %v1232_v42 = vadd.f32 %v2890_v43, %v1231_v40  ;;  %v872_v44 = vpop.f32.mrf.mxu0  ;;  %v1053_v46 = vpop.f32.mrf.mxu1 }
 0x1f2   : > { %v873_v18 = vadd.f32 %v2869_v34, %v872_v44  ;;  %v1054_v48 = vadd.f32 %v2861_v19, %v1053_v46 }
 0x1f3   : > { %v1600_v45 = vpack.c.bf16 %v1272_v41, %v1272_v41  ;;  %v1584_v47 = vpack.c.bf16 %v1232_v42, %v1232_v42 }
 0x1f4   : > { %v1328_v49 = vpack.c.bf16 %v873_v18, %v873_v18  ;;  %v1457_v50 = vpack.c.bf16 %v1054_v48, %v1054_v48 }
 0x1f5   : > { %1665 = vst.msk [vmem:[%s2456_s29 + $0xec] sm:$0xf] %vm1605_vm2, %v1600_v45 }
 0x1f6   : > { %1649 = vst.msk [vmem:[%s2456_s29 + $0xac] sm:$0xf] %vm1605_vm2, %v1584_v47 }
 0x1f7   : > { %1393 = vst.msk [vmem:[%s2427_s19 + $0xb0] sm:$0xf] %vm1348_vm1, %v1328_v49 }
 0x1f8   : > { %1521 = vst.msk [vmem:[%s2434_s22 + $0xb0] sm:$0xf] %vm1348_vm1, %v1457_v50  ;;  %v1274_v14 = vpop.f32.mrf.mxu3  ;;  %v1234_v12 = vpop.f32.mrf.mxu2 }
 0x1f9   : > { %v1275_v51 = vadd.f32 %v2890_v43, %v1274_v14  ;;  %v1235_v52 = vadd.f32 %v2890_v43, %v1234_v12  ;;  %v874_v53 = vpop.f32.mrf.mxu0  ;;  %v1055_v56 = vpop.f32.mrf.mxu1 }
 0x1fa   : > { %v875_v55 = vadd.f32 %v2869_v34, %v874_v53  ;;  %v1056_v58 = vadd.f32 %v2861_v19, %v1055_v56 }
 0x1fb   : > { %v1601_v54 = vpack.c.bf16 %v1275_v51, %v1275_v51  ;;  %v1585_v57 = vpack.c.bf16 %v1235_v52, %v1235_v52 }
 0x1fc   : > { %v1329_v59 = vpack.c.bf16 %v875_v55, %v875_v55  ;;  %v1458_v60 = vpack.c.bf16 %v1056_v58, %v1056_v58 }
 0x1fd   : > { %1666 = vst.msk [vmem:[%s2456_s29 + $0xf0] sm:$0xf] %vm1605_vm2, %v1601_v54 }
 0x1fe   : > { %1650 = vst.msk [vmem:[%s2456_s29 + $0xb0] sm:$0xf] %vm1605_vm2, %v1585_v57 }
 0x1ff   : > { %1394 = vst.msk [vmem:[%s2427_s19 + $0xb4] sm:$0xf] %vm1348_vm1, %v1329_v59 }
 0x200   : > { %1522 = vst.msk [vmem:[%s2434_s22 + $0xb4] sm:$0xf] %vm1348_vm1, %v1458_v60  ;;  %v1276_v8 = vpop.f32.mrf.mxu3  ;;  %v1236_v61 = vpop.f32.mrf.mxu2 }
 0x201   : > { %v1277_v62 = vadd.f32 %v2890_v43, %v1276_v8  ;;  %v1237_v63 = vadd.f32 %v2890_v43, %v1236_v61  ;;  %v877_v0 = vpop.f32.mrf.mxu0  ;;  %v1058_v3 = vpop.f32.mrf.mxu1 }
 0x202   : > { %v878_v2 = vadd.f32 %v2869_v34, %v877_v0  ;;  %v1059_v4 = vadd.f32 %v2861_v19, %v1058_v3 }
 0x203   : > { %v1602_v1 = vpack.c.bf16 %v1277_v62, %v1277_v62  ;;  %v1586_v5 = vpack.c.bf16 %v1237_v63, %v1237_v63 }
 0x204   : > { %v1330_v7 = vpack.c.bf16 %v878_v2, %v878_v2  ;;  %v1459_v9 = vpack.c.bf16 %v1059_v4, %v1059_v4 }
 0x205   : > { %1667 = vst.msk [vmem:[%s2456_s29 + $0xf4] sm:$0xf] %vm1605_vm2, %v1602_v1 }
 0x206   : > { %1651 = vst.msk [vmem:[%s2456_s29 + $0xb4] sm:$0xf] %vm1605_vm2, %v1586_v5 }
 0x207   : > { %1395 = vst.msk [vmem:[%s2427_s19 + $0xb8] sm:$0xf] %vm1348_vm1, %v1330_v7 }
 0x208   : > { %1523 = vst.msk [vmem:[%s2434_s22 + $0xb8] sm:$0xf] %vm1348_vm1, %v1459_v9  ;;  %v1279_v11 = vpop.f32.mrf.mxu3  ;;  %v1239_v13 = vpop.f32.mrf.mxu2 }
 0x209   : > { %v1280_v15 = vadd.f32 %v2890_v43, %v1279_v11  ;;  %v1240_v17 = vadd.f32 %v2890_v43, %v1239_v13  ;;  %v879_v16 = vpop.f32.mrf.mxu0  ;;  %v1060_v23 = vpop.f32.mrf.mxu1 }
 0x20a   : > { %v880_v22 = vadd.f32 %v2869_v34, %v879_v16  ;;  %v1061_v25 = vadd.f32 %v2861_v19, %v1060_v23 }
 0x20b   : > { %v1603_v21 = vpack.c.bf16 %v1280_v15, %v1280_v15  ;;  %v1587_v24 = vpack.c.bf16 %v1240_v17, %v1240_v17 }
 0x20c   : > { %v1331_v26 = vpack.c.bf16 %v880_v22, %v880_v22  ;;  %v1460_v27 = vpack.c.bf16 %v1061_v25, %v1061_v25 }
 0x20d   : > { %1668 = vst.msk [vmem:[%s2456_s29 + $0xf8] sm:$0xf] %vm1605_vm2, %v1603_v21 }
 0x20e   : > { %1652 = vst.msk [vmem:[%s2456_s29 + $0xb8] sm:$0xf] %vm1605_vm2, %v1587_v24 }
 0x20f   : > { %1396 = vst.msk [vmem:[%s2427_s19 + $0xbc] sm:$0xf] %vm1348_vm1, %v1331_v26 }
 0x210   : > { %1524 = vst.msk [vmem:[%s2434_s22 + $0xbc] sm:$0xf] %vm1348_vm1, %v1460_v27  ;;  %v1281_v29 = vpop.f32.mrf.mxu3  ;;  %v1241_v20 = vpop.f32.mrf.mxu2 }
 0x211   : > { %v1282_v34 = vadd.f32 %v2890_v43, %v1281_v29  ;;  %v1242_v10 = vadd.f32 %v2890_v43, %v1241_v20 }
 0x213   : > { %v1604_v30 = vpack.c.bf16 %v1282_v34, %v1282_v34  ;;  %v1588_v31 = vpack.c.bf16 %v1242_v10, %v1242_v10 }
 0x215   : > { %1669 = vst.msk [vmem:[%s2456_s29 + $0xfc] sm:$0xf] %vm1605_vm2, %v1604_v30 }
 0x216   : > { %1653 = vst.msk [vmem:[%s2456_s29 + $0xbc] sm:$0xf] %vm1605_vm2, %v1588_v31 }
 0x217 PF: > { %s20_s13 = sadd.s32 1, %s2240_s13   ;;  %s3156_s30 = smov %s2232_s11 }
 0x218   : > { %p17_p7 = scmp.ge.s32.totalorder %s20_s13, 6   ;;  %s3157_s10 = smov %s2236_s12 }
 0x219   : > { %s3158_s11 = smov %s3161_s14  ;;  %s3159_s12 = smov %s3165_s15 }
 0x21a   :  { %19 = sbr.rel (!%p17_p7) target bundleno = 3 (0x3), region = 102 }

</bundles_post_ra>
